<compile_context>
chip_gen: v7x
topology: tpu7x:2x2x1
jax: 0.10.0
libtpu: 0.0.40
codegen_flags: <defaults>
</compile_context>

<pallas_src>
import numpy as np
import jax
import jax.numpy as jnp
from jax.experimental import pallas as pl
from jax.experimental.pallas import tpu as pltpu

KSIZE = 3   # kernel_size of every Conv1d in the module
CP = 128    # lane-padded channel width (all Cin/Cout padded to this)


def _fused_cnn_kernel(x_ref, w_ref, b_ref, mask_ref, o_ref, buf_in, buf_a, buf_b):
    # x_ref   : (TB, L, CIN)        raw (unpadded-channel) input sequences
    # w_ref   : (NL, K, CP, CP)     all layer weights, bf16, (K, Cin, Cout) layout, zero-padded
    # b_ref   : (NL, 1, CP)         all layer biases, f32, zero-padded
    # mask_ref: (NR, 1)             f32 row mask: 1 on valid slab rows, 0 on halo rows
    # o_ref   : (TB, L, CP)         channel-padded output
    # buf_in  : (N, CP) bf16        input staging slab (only ever written here)
    # buf_a/b : (N, CP) bf16        ping-pong activation slabs
    n_layers = w_ref.shape[0]
    ksize = w_ref.shape[1]
    tb, seq, cin = x_ref.shape
    n_rows = buf_in.shape[0]          # tb * (seq + 2)
    cp = buf_in.shape[1]
    stride = seq + 2
    nr = n_rows - 2                   # rows produced by the 3 shifted dots

    # --- stage the input into the halo-padded slab --------------------------------
    # buf_in must be fully re-zeroed every step: its padded lanes [cin:] and halo rows
    # must be exactly zero, and per-core scratch contents are undefined under megacore
    # (a program_id==0-only init would never run on the second TensorCore).
    buf_in[...] = jnp.zeros((n_rows, cp), buf_in.dtype)
    for t in range(tb):                                   # static unroll, tb is small
        r0 = t * stride + 1
        buf_in[r0:r0 + seq, :cin] = x_ref[t].astype(buf_in.dtype)

    # The outermost halo rows (0 and N-1) of the ping-pong buffers are never touched by
    # the masked layer stores below, so re-zero just those two rows per step.
    zrow = jnp.zeros((1, cp), buf_a.dtype)
    buf_a[0:1, :] = zrow
    buf_a[n_rows - 1:n_rows, :] = zrow
    buf_b[0:1, :] = zrow
    buf_b[n_rows - 1:n_rows, :] = zrow

    mask = mask_ref[...]                                  # (nr, 1) f32

    bufs = (buf_in, buf_a, buf_b)
    src_i = 0
    for l in range(n_layers):                             # static unroll over 5 layers
        src = bufs[src_i]
        # bias-initialized accumulator + 3 shifted bf16 MXU matmuls, f32 accumulation
        acc = jnp.dot(src[0:nr, :], w_ref[l, 0],
                      preferred_element_type=jnp.float32) + b_ref[l]
        for k in range(1, ksize):
            acc = acc + jnp.dot(src[k:k + nr, :], w_ref[l, k],
                                preferred_element_type=jnp.float32)
        if l < n_layers - 1:
            # ReLU, then zero the cross-sequence garbage on interior halo rows.
            acc = jnp.maximum(acc, 0.0) * mask
            dst_i = 1 + (l % 2)                           # ping-pong buf_a <-> buf_b
            dst = bufs[dst_i]
            dst[1:n_rows - 1, :] = acc.astype(dst.dtype)  # one lane-dense slab store
            src_i = dst_i
        else:
            # Final conv (no ReLU): write only the valid rows of each sequence.
            for t in range(tb):
                r0 = t * stride
                o_ref[t] = acc[r0:r0 + seq, :].astype(o_ref.dtype)


def _pick_batch_tile(batch, seq):
    """Largest divisor of `batch` that keeps the slab <= ~512 rows and (if possible)
    leaves >= 2 grid steps so both v7x TensorCores get work."""
    cap = max(1, min(8, 512 // (seq + 2)))
    divisors = [tb for tb in range(1, batch + 1) if batch % tb == 0 and tb <= cap]
    two_step = [tb for tb in divisors if batch // tb >= 2]
    return max(two_step) if two_step else max(divisors)


def reconstruction_cnn_forward(x, w_all, b_all, input_dim, batch_tile=None):
    """x: (B, L, input_dim) f32 -> (B, L, input_dim). Matches ReconstructionCNN.forward (eval)."""
    B, L, cin = x.shape
    nl, ksize = int(w_all.shape[0]), int(w_all.shape[1])
    cp = int(w_all.shape[-1])
    tb = batch_tile if batch_tile is not None else _pick_batch_tile(B, L)
    assert B % tb == 0
    grid = B // tb
    stride = L + 2
    n_rows = tb * stride
    nr = n_rows - 2

    # Precomputed (host-side) row mask: 1 on valid rows, 0 on interior halo rows.
    mask_np = np.zeros((nr, 1), np.float32)
    for t in range(tb):
        mask_np[t * stride:t * stride + L, 0] = 1.0
    halo_mask = jnp.asarray(mask_np)

    out = pl.pallas_call(
        _fused_cnn_kernel,
        out_shape=jax.ShapeDtypeStruct((B, L, cp), x.dtype),
        grid=(grid,),
        in_specs=[
            pl.BlockSpec((tb, L, cin), lambda g: (g, 0, 0)),        # raw per-group input
            pl.BlockSpec((nl, ksize, cp, cp), lambda g: (0, 0, 0, 0)),  # bf16 weights, VMEM-resident
            pl.BlockSpec((nl, 1, cp), lambda g: (0, 0, 0)),          # f32 biases
            pl.BlockSpec((nr, 1), lambda g: (0, 0)),                 # halo row mask
        ],
        out_specs=pl.BlockSpec((tb, L, cp), lambda g: (g, 0, 0)),
        scratch_shapes=[
            pltpu.VMEM((n_rows, cp), jnp.bfloat16),   # buf_in (input staging slab)
            pltpu.VMEM((n_rows, cp), jnp.bfloat16),   # buf_a
            pltpu.VMEM((n_rows, cp), jnp.bfloat16),   # buf_b
        ],
        compiler_params=pltpu.CompilerParams(
            dimension_semantics=("parallel",),        # shard batch groups over v7x's 2 TCs
            vmem_limit_bytes=32 * 1024 * 1024),       # headroom for long L on v5e
    )(x, w_all, b_all, halo_mask)

    return out[..., :input_dim]                       # drop padded channels


# ---------------- parameter construction / packing ----------------
def init_params(key, input_dim, hidden_channels):
    """PyTorch-style Conv1d init (uniform(-1/sqrt(fan_in), +)), weights as (K, Cin, Cout) f32."""
    hidden = list(hidden_channels)
    chans = []
    in_ch = input_dim
    for out_ch in hidden:                 # encoder
        chans.append((in_ch, out_ch))
        in_ch = out_ch
    for out_ch in reversed(hidden):       # decoder hidden layers (hidden_channels.reverse())
        chans.append((in_ch, out_ch))
        in_ch = out_ch
    chans.append((in_ch, input_dim))      # final reconstruction conv (no ReLU)

    params = []
    for (cin, cout) in chans:
        key, kw, kb = jax.random.split(key, 3)
        bound = 1.0 / (cin * KSIZE) ** 0.5
        w = jax.random.uniform(kw, (KSIZE, cin, cout), jnp.float32, -bound, bound)
        b = jax.random.uniform(kb, (cout,), jnp.float32, -bound, bound)
        params.append((w, b))
    return params


def pack_params(params, cp=CP):
    """Stack & zero-pad per-layer params: weights -> (NL, K, CP, CP) bf16, biases -> (NL, 1, CP) f32."""
    nl = len(params)
    w_all = jnp.zeros((nl, KSIZE, cp, cp), jnp.bfloat16)
    b_all = jnp.zeros((nl, 1, cp), jnp.float32)
    for i, (w, b) in enumerate(params):
        cin, cout = w.shape[1], w.shape[2]
        w_all = w_all.at[i, :, :cin, :cout].set(w.astype(jnp.bfloat16))
        b_all = b_all.at[i, 0, :cout].set(b)
    return w_all, b_all


# ---------------- pure-JAX reference (correctness check only) ----------------
def _conv1d_ref(x, w, b, apply_relu):
    out = jax.lax.conv_general_dilated(
        x, w, window_strides=(1,), padding="SAME",
        dimension_numbers=("NHC", "HIO", "NHC"))
    out = out + b
    return jnp.maximum(out, 0.0) if apply_relu else out


def reconstruction_cnn_ref(x, params):
    h = x
    n = len(params)
    for i, (w, b) in enumerate(params):
        h = _conv1d_ref(h, w, b, i < n - 1)
    return h


if __name__ == "__main__":
    B, SEQ, INPUT_DIM = 8, 16, 7          # ETTm2 has 7 feature columns; small demo shapes
    HIDDEN = [64, 128]                    # module defaults

    key = jax.random.PRNGKey(0)
    key, kx = jax.random.split(key)
    x = jax.random.normal(kx, (B, SEQ, INPUT_DIM), jnp.float32)

    params = init_params(key, INPUT_DIM, HIDDEN)
    w_all, b_all = pack_params(params)

    out = reconstruction_cnn_forward(x, w_all, b_all, INPUT_DIM)
    out = jax.block_until_ready(out)

    # Reference uses the same bf16-rounded weights (kernel stores weights/activations in
    # bf16 with f32 accumulation), so only activation quantization differs.
    params_bf16 = [(w.astype(jnp.bfloat16).astype(jnp.float32), b) for (w, b) in params]
    ref = jax.block_until_ready(reconstruction_cnn_ref(x, params_bf16))

    assert out.shape == (B, SEQ, INPUT_DIM)
    assert jnp.allclose(out, ref, atol=3e-2, rtol=3e-2)

    print("KERNEL_OK")
</pallas_src>

<mosaic_0001>
module attributes {stable_mosaic.version = 11 : i64} {
  func.func @_fused_cnn_kernel(%arg0: i32, %arg1: memref<4x16x7xf32, #tpu.memory_space<vmem>>, %arg2: memref<5x3x128x128xbf16, #tpu.memory_space<vmem>>, %arg3: memref<5x1x128xf32, #tpu.memory_space<vmem>>, %arg4: memref<70x1xf32, #tpu.memory_space<vmem>>, %arg5: memref<4x16x128xf32, #tpu.memory_space<vmem>>, %arg6: memref<72x128xbf16, #tpu.memory_space<vmem>>, %arg7: memref<72x128xbf16, #tpu.memory_space<vmem>>, %arg8: memref<72x128xbf16, #tpu.memory_space<vmem>>) attributes {dimension_semantics = [#tpu.dimension_semantics<parallel>], iteration_bounds = array<i64: 2>, scalar_prefetch = 0 : i64, scratch_operands = 3 : i64, tpu.core_type = #tpu.core_type<tc>, window_params = [{transform_indices = @transform_0, window_bounds = array<i64: 4, 16, 7>}, {pipeline_mode = #tpu.pipeline_mode<synchronous>, transform_indices = @transform_1, window_bounds = array<i64: 5, 3, 128, 128>}, {pipeline_mode = #tpu.pipeline_mode<synchronous>, transform_indices = @transform_2, window_bounds = array<i64: 5, 1, 128>}, {pipeline_mode = #tpu.pipeline_mode<synchronous>, transform_indices = @transform_3, window_bounds = array<i64: 70, 1>}, {transform_indices = @transform_4, window_bounds = array<i64: 4, 16, 128>}]} {
    %cst = arith.constant 0.000000e+00 : bf16
    %0 = vector.broadcast %cst : bf16 to vector<72x128xbf16>
    %c0 = arith.constant 0 : index
    %c0_0 = arith.constant 0 : index
    %1 = vector.load %arg6[%c0, %c0_0] : memref<72x128xbf16, #tpu.memory_space<vmem>>, vector<72x128xbf16>
    tpu.vector_store %arg6[%c0, %c0_0], %0 {strides = array<i32>} : memref<72x128xbf16, #tpu.memory_space<vmem>>, vector<72x128xbf16>,
    %c0_1 = arith.constant 0 : index
    %c0_2 = arith.constant 0 : index
    %c0_3 = arith.constant 0 : index
    %2 = vector.load %arg1[%c0_1, %c0_2, %c0_3] : memref<4x16x7xf32, #tpu.memory_space<vmem>>, vector<1x16x7xf32>
    %3 = vector.shape_cast %2 : vector<1x16x7xf32> to vector<16x7xf32>
    %4 = arith.truncf %3 : vector<16x7xf32> to vector<16x7xbf16>
    %c1 = arith.constant 1 : index
    %c0_4 = arith.constant 0 : index
    %5 = vector.load %arg6[%c1, %c0_4] : memref<72x128xbf16, #tpu.memory_space<vmem>>, vector<16x7xbf16>
    tpu.vector_store %arg6[%c1, %c0_4], %4 {strides = array<i32>} : memref<72x128xbf16, #tpu.memory_space<vmem>>, vector<16x7xbf16>,
    %c1_5 = arith.constant 1 : index
    %c0_6 = arith.constant 0 : index
    %c0_7 = arith.constant 0 : index
    %6 = vector.load %arg1[%c1_5, %c0_6, %c0_7] : memref<4x16x7xf32, #tpu.memory_space<vmem>>, vector<1x16x7xf32>
    %7 = vector.shape_cast %6 : vector<1x16x7xf32> to vector<16x7xf32>
    %8 = arith.truncf %7 : vector<16x7xf32> to vector<16x7xbf16>
    %c19 = arith.constant 19 : index
    %c0_8 = arith.constant 0 : index
    %9 = vector.load %arg6[%c19, %c0_8] : memref<72x128xbf16, #tpu.memory_space<vmem>>, vector<16x7xbf16>
    tpu.vector_store %arg6[%c19, %c0_8], %8 {strides = array<i32>} : memref<72x128xbf16, #tpu.memory_space<vmem>>, vector<16x7xbf16>,
    %c2 = arith.constant 2 : index
    %c0_9 = arith.constant 0 : index
    %c0_10 = arith.constant 0 : index
    %10 = vector.load %arg1[%c2, %c0_9, %c0_10] : memref<4x16x7xf32, #tpu.memory_space<vmem>>, vector<1x16x7xf32>
    %11 = vector.shape_cast %10 : vector<1x16x7xf32> to vector<16x7xf32>
    %12 = arith.truncf %11 : vector<16x7xf32> to vector<16x7xbf16>
    %c37 = arith.constant 37 : index
    %c0_11 = arith.constant 0 : index
    %13 = vector.load %arg6[%c37, %c0_11] : memref<72x128xbf16, #tpu.memory_space<vmem>>, vector<16x7xbf16>
    tpu.vector_store %arg6[%c37, %c0_11], %12 {strides = array<i32>} : memref<72x128xbf16, #tpu.memory_space<vmem>>, vector<16x7xbf16>,
    %c3 = arith.constant 3 : index
    %c0_12 = arith.constant 0 : index
    %c0_13 = arith.constant 0 : index
    %14 = vector.load %arg1[%c3, %c0_12, %c0_13] : memref<4x16x7xf32, #tpu.memory_space<vmem>>, vector<1x16x7xf32>
    %15 = vector.shape_cast %14 : vector<1x16x7xf32> to vector<16x7xf32>
    %16 = arith.truncf %15 : vector<16x7xf32> to vector<16x7xbf16>
    %c55 = arith.constant 55 : index
    %c0_14 = arith.constant 0 : index
    %17 = vector.load %arg6[%c55, %c0_14] : memref<72x128xbf16, #tpu.memory_space<vmem>>, vector<16x7xbf16>
    tpu.vector_store %arg6[%c55, %c0_14], %16 {strides = array<i32>} : memref<72x128xbf16, #tpu.memory_space<vmem>>, vector<16x7xbf16>,
    %cst_15 = arith.constant 0.000000e+00 : bf16
    %18 = vector.broadcast %cst_15 : bf16 to vector<1x128xbf16>
    %c0_16 = arith.constant 0 : index
    %c0_17 = arith.constant 0 : index
    %19 = vector.load %arg7[%c0_16, %c0_17] : memref<72x128xbf16, #tpu.memory_space<vmem>>, vector<1x128xbf16>
    tpu.vector_store %arg7[%c0_16, %c0_17], %18 {strides = array<i32>} : memref<72x128xbf16, #tpu.memory_space<vmem>>, vector<1x128xbf16>,
    %c71 = arith.constant 71 : index
    %c0_18 = arith.constant 0 : index
    %20 = vector.load %arg7[%c71, %c0_18] : memref<72x128xbf16, #tpu.memory_space<vmem>>, vector<1x128xbf16>
    tpu.vector_store %arg7[%c71, %c0_18], %18 {strides = array<i32>} : memref<72x128xbf16, #tpu.memory_space<vmem>>, vector<1x128xbf16>,
    %c0_19 = arith.constant 0 : index
    %c0_20 = arith.constant 0 : index
    %21 = vector.load %arg8[%c0_19, %c0_20] : memref<72x128xbf16, #tpu.memory_space<vmem>>, vector<1x128xbf16>
    tpu.vector_store %arg8[%c0_19, %c0_20], %18 {strides = array<i32>} : memref<72x128xbf16, #tpu.memory_space<vmem>>, vector<1x128xbf16>,
    %c71_21 = arith.constant 71 : index
    %c0_22 = arith.constant 0 : index
    %22 = vector.load %arg8[%c71_21, %c0_22] : memref<72x128xbf16, #tpu.memory_space<vmem>>, vector<1x128xbf16>
    tpu.vector_store %arg8[%c71_21, %c0_22], %18 {strides = array<i32>} : memref<72x128xbf16, #tpu.memory_space<vmem>>, vector<1x128xbf16>,
    %c0_23 = arith.constant 0 : index
    %c0_24 = arith.constant 0 : index
    %23 = vector.load %arg4[%c0_23, %c0_24] : memref<70x1xf32, #tpu.memory_space<vmem>>, vector<70x1xf32>
    %c0_25 = arith.constant 0 : index
    %c0_26 = arith.constant 0 : index
    %24 = vector.load %arg6[%c0_25, %c0_26] : memref<72x128xbf16, #tpu.memory_space<vmem>>, vector<70x128xbf16>
    %c0_27 = arith.constant 0 : index
    %c0_28 = arith.constant 0 : index
    %c0_29 = arith.constant 0 : index
    %c0_30 = arith.constant 0 : index
    %25 = vector.load %arg2[%c0_27, %c0_28, %c0_29, %c0_30] : memref<5x3x128x128xbf16, #tpu.memory_space<vmem>>, vector<1x1x128x128xbf16>
    %26 = vector.shape_cast %25 : vector<1x1x128x128xbf16> to vector<128x128xbf16>
    %cst_31 = arith.constant dense<0.000000e+00> : vector<70x128xf32>
    %27 = tpu.matmul %24, %26, %cst_31 {dimension_numbers = #tpu.dot_dimension_numbers<[1], [0], [0], [1], [0, 0, 1, 1], [], []>} : vector<70x128xbf16>, vector<128x128xbf16>, vector<70x128xf32> -> vector<70x128xf32>
    %c0_32 = arith.constant 0 : index
    %c0_33 = arith.constant 0 : index
    %c0_34 = arith.constant 0 : index
    %28 = vector.load %arg3[%c0_32, %c0_33, %c0_34] : memref<5x1x128xf32, #tpu.memory_space<vmem>>, vector<1x1x128xf32>
    %29 = vector.shape_cast %28 : vector<1x1x128xf32> to vector<1x128xf32>
    %30 = vector.broadcast %29 : vector<1x128xf32> to vector<70x128xf32>
    %31 = arith.addf %27, %30 : vector<70x128xf32>
    %c1_35 = arith.constant 1 : index
    %c0_36 = arith.constant 0 : index
    %32 = vector.load %arg6[%c1_35, %c0_36] : memref<72x128xbf16, #tpu.memory_space<vmem>>, vector<70x128xbf16>
    %c0_37 = arith.constant 0 : index
    %c1_38 = arith.constant 1 : index
    %c0_39 = arith.constant 0 : index
    %c0_40 = arith.constant 0 : index
    %33 = vector.load %arg2[%c0_37, %c1_38, %c0_39, %c0_40] : memref<5x3x128x128xbf16, #tpu.memory_space<vmem>>, vector<1x1x128x128xbf16>
    %34 = vector.shape_cast %33 : vector<1x1x128x128xbf16> to vector<128x128xbf16>
    %cst_41 = arith.constant dense<0.000000e+00> : vector<70x128xf32>
    %35 = tpu.matmul %32, %34, %cst_41 {dimension_numbers = #tpu.dot_dimension_numbers<[1], [0], [0], [1], [0, 0, 1, 1], [], []>} : vector<70x128xbf16>, vector<128x128xbf16>, vector<70x128xf32> -> vector<70x128xf32>
    %36 = arith.addf %31, %35 : vector<70x128xf32>
    %c2_42 = arith.constant 2 : index
    %c0_43 = arith.constant 0 : index
    %37 = vector.load %arg6[%c2_42, %c0_43] : memref<72x128xbf16, #tpu.memory_space<vmem>>, vector<70x128xbf16>
    %c0_44 = arith.constant 0 : index
    %c2_45 = arith.constant 2 : index
    %c0_46 = arith.constant 0 : index
    %c0_47 = arith.constant 0 : index
    %38 = vector.load %arg2[%c0_44, %c2_45, %c0_46, %c0_47] : memref<5x3x128x128xbf16, #tpu.memory_space<vmem>>, vector<1x1x128x128xbf16>
    %39 = vector.shape_cast %38 : vector<1x1x128x128xbf16> to vector<128x128xbf16>
    %cst_48 = arith.constant dense<0.000000e+00> : vector<70x128xf32>
    %40 = tpu.matmul %37, %39, %cst_48 {dimension_numbers = #tpu.dot_dimension_numbers<[1], [0], [0], [1], [0, 0, 1, 1], [], []>} : vector<70x128xbf16>, vector<128x128xbf16>, vector<70x128xf32> -> vector<70x128xf32>
    %41 = arith.addf %36, %40 : vector<70x128xf32>
    %cst_49 = arith.constant 0.000000e+00 : f32
    %42 = vector.broadcast %cst_49 : f32 to vector<70x128xf32>
    %43 = arith.maximumf %41, %42 : vector<70x128xf32>
    %44 = vector.broadcast %23 : vector<70x1xf32> to vector<70x128xf32>
    %45 = arith.mulf %43, %44 : vector<70x128xf32>
    %46 = arith.truncf %45 : vector<70x128xf32> to vector<70x128xbf16>
    %c1_50 = arith.constant 1 : index
    %c0_51 = arith.constant 0 : index
    %47 = vector.load %arg7[%c1_50, %c0_51] : memref<72x128xbf16, #tpu.memory_space<vmem>>, vector<70x128xbf16>
    tpu.vector_store %arg7[%c1_50, %c0_51], %46 {strides = array<i32>} : memref<72x128xbf16, #tpu.memory_space<vmem>>, vector<70x128xbf16>,
    %c0_52 = arith.constant 0 : index
    %c0_53 = arith.constant 0 : index
    %48 = vector.load %arg7[%c0_52, %c0_53] : memref<72x128xbf16, #tpu.memory_space<vmem>>, vector<70x128xbf16>
    %c1_54 = arith.constant 1 : index
    %c0_55 = arith.constant 0 : index
    %c0_56 = arith.constant 0 : index
    %c0_57 = arith.constant 0 : index
    %49 = vector.load %arg2[%c1_54, %c0_55, %c0_56, %c0_57] : memref<5x3x128x128xbf16, #tpu.memory_space<vmem>>, vector<1x1x128x128xbf16>
    %50 = vector.shape_cast %49 : vector<1x1x128x128xbf16> to vector<128x128xbf16>
    %cst_58 = arith.constant dense<0.000000e+00> : vector<70x128xf32>
    %51 = tpu.matmul %48, %50, %cst_58 {dimension_numbers = #tpu.dot_dimension_numbers<[1], [0], [0], [1], [0, 0, 1, 1], [], []>} : vector<70x128xbf16>, vector<128x128xbf16>, vector<70x128xf32> -> vector<70x128xf32>
    %c1_59 = arith.constant 1 : index
    %c0_60 = arith.constant 0 : index
    %c0_61 = arith.constant 0 : index
    %52 = vector.load %arg3[%c1_59, %c0_60, %c0_61] : memref<5x1x128xf32, #tpu.memory_space<vmem>>, vector<1x1x128xf32>
    %53 = vector.shape_cast %52 : vector<1x1x128xf32> to vector<1x128xf32>
    %54 = vector.broadcast %53 : vector<1x128xf32> to vector<70x128xf32>
    %55 = arith.addf %51, %54 : vector<70x128xf32>
    %c1_62 = arith.constant 1 : index
    %c0_63 = arith.constant 0 : index
    %56 = vector.load %arg7[%c1_62, %c0_63] : memref<72x128xbf16, #tpu.memory_space<vmem>>, vector<70x128xbf16>
    %c1_64 = arith.constant 1 : index
    %c1_65 = arith.constant 1 : index
    %c0_66 = arith.constant 0 : index
    %c0_67 = arith.constant 0 : index
    %57 = vector.load %arg2[%c1_64, %c1_65, %c0_66, %c0_67] : memref<5x3x128x128xbf16, #tpu.memory_space<vmem>>, vector<1x1x128x128xbf16>
    %58 = vector.shape_cast %57 : vector<1x1x128x128xbf16> to vector<128x128xbf16>
    %cst_68 = arith.constant dense<0.000000e+00> : vector<70x128xf32>
    %59 = tpu.matmul %56, %58, %cst_68 {dimension_numbers = #tpu.dot_dimension_numbers<[1], [0], [0], [1], [0, 0, 1, 1], [], []>} : vector<70x128xbf16>, vector<128x128xbf16>, vector<70x128xf32> -> vector<70x128xf32>
    %60 = arith.addf %55, %59 : vector<70x128xf32>
    %c2_69 = arith.constant 2 : index
    %c0_70 = arith.constant 0 : index
    %61 = vector.load %arg7[%c2_69, %c0_70] : memref<72x128xbf16, #tpu.memory_space<vmem>>, vector<70x128xbf16>
    %c1_71 = arith.constant 1 : index
    %c2_72 = arith.constant 2 : index
    %c0_73 = arith.constant 0 : index
    %c0_74 = arith.constant 0 : index
    %62 = vector.load %arg2[%c1_71, %c2_72, %c0_73, %c0_74] : memref<5x3x128x128xbf16, #tpu.memory_space<vmem>>, vector<1x1x128x128xbf16>
    %63 = vector.shape_cast %62 : vector<1x1x128x128xbf16> to vector<128x128xbf16>
    %cst_75 = arith.constant dense<0.000000e+00> : vector<70x128xf32>
    %64 = tpu.matmul %61, %63, %cst_75 {dimension_numbers = #tpu.dot_dimension_numbers<[1], [0], [0], [1], [0, 0, 1, 1], [], []>} : vector<70x128xbf16>, vector<128x128xbf16>, vector<70x128xf32> -> vector<70x128xf32>
    %65 = arith.addf %60, %64 : vector<70x128xf32>
    %cst_76 = arith.constant 0.000000e+00 : f32
    %66 = vector.broadcast %cst_76 : f32 to vector<70x128xf32>
    %67 = arith.maximumf %65, %66 : vector<70x128xf32>
    %68 = vector.broadcast %23 : vector<70x1xf32> to vector<70x128xf32>
    %69 = arith.mulf %67, %68 : vector<70x128xf32>
    %70 = arith.truncf %69 : vector<70x128xf32> to vector<70x128xbf16>
    %c1_77 = arith.constant 1 : index
    %c0_78 = arith.constant 0 : index
    %71 = vector.load %arg8[%c1_77, %c0_78] : memref<72x128xbf16, #tpu.memory_space<vmem>>, vector<70x128xbf16>
    tpu.vector_store %arg8[%c1_77, %c0_78], %70 {strides = array<i32>} : memref<72x128xbf16, #tpu.memory_space<vmem>>, vector<70x128xbf16>,
    %c0_79 = arith.constant 0 : index
    %c0_80 = arith.constant 0 : index
    %72 = vector.load %arg8[%c0_79, %c0_80] : memref<72x128xbf16, #tpu.memory_space<vmem>>, vector<70x128xbf16>
    %c2_81 = arith.constant 2 : index
    %c0_82 = arith.constant 0 : index
    %c0_83 = arith.constant 0 : index
    %c0_84 = arith.constant 0 : index
    %73 = vector.load %arg2[%c2_81, %c0_82, %c0_83, %c0_84] : memref<5x3x128x128xbf16, #tpu.memory_space<vmem>>, vector<1x1x128x128xbf16>
    %74 = vector.shape_cast %73 : vector<1x1x128x128xbf16> to vector<128x128xbf16>
    %cst_85 = arith.constant dense<0.000000e+00> : vector<70x128xf32>
    %75 = tpu.matmul %72, %74, %cst_85 {dimension_numbers = #tpu.dot_dimension_numbers<[1], [0], [0], [1], [0, 0, 1, 1], [], []>} : vector<70x128xbf16>, vector<128x128xbf16>, vector<70x128xf32> -> vector<70x128xf32>
    %c2_86 = arith.constant 2 : index
    %c0_87 = arith.constant 0 : index
    %c0_88 = arith.constant 0 : index
    %76 = vector.load %arg3[%c2_86, %c0_87, %c0_88] : memref<5x1x128xf32, #tpu.memory_space<vmem>>, vector<1x1x128xf32>
    %77 = vector.shape_cast %76 : vector<1x1x128xf32> to vector<1x128xf32>
    %78 = vector.broadcast %77 : vector<1x128xf32> to vector<70x128xf32>
    %79 = arith.addf %75, %78 : vector<70x128xf32>
    %c1_89 = arith.constant 1 : index
    %c0_90 = arith.constant 0 : index
    %80 = vector.load %arg8[%c1_89, %c0_90] : memref<72x128xbf16, #tpu.memory_space<vmem>>, vector<70x128xbf16>
    %c2_91 = arith.constant 2 : index
    %c1_92 = arith.constant 1 : index
    %c0_93 = arith.constant 0 : index
    %c0_94 = arith.constant 0 : index
    %81 = vector.load %arg2[%c2_91, %c1_92, %c0_93, %c0_94] : memref<5x3x128x128xbf16, #tpu.memory_space<vmem>>, vector<1x1x128x128xbf16>
    %82 = vector.shape_cast %81 : vector<1x1x128x128xbf16> to vector<128x128xbf16>
    %cst_95 = arith.constant dense<0.000000e+00> : vector<70x128xf32>
    %83 = tpu.matmul %80, %82, %cst_95 {dimension_numbers = #tpu.dot_dimension_numbers<[1], [0], [0], [1], [0, 0, 1, 1], [], []>} : vector<70x128xbf16>, vector<128x128xbf16>, vector<70x128xf32> -> vector<70x128xf32>
    %84 = arith.addf %79, %83 : vector<70x128xf32>
    %c2_96 = arith.constant 2 : index
    %c0_97 = arith.constant 0 : index
    %85 = vector.load %arg8[%c2_96, %c0_97] : memref<72x128xbf16, #tpu.memory_space<vmem>>, vector<70x128xbf16>
    %c2_98 = arith.constant 2 : index
    %c2_99 = arith.constant 2 : index
    %c0_100 = arith.constant 0 : index
    %c0_101 = arith.constant 0 : index
    %86 = vector.load %arg2[%c2_98, %c2_99, %c0_100, %c0_101] : memref<5x3x128x128xbf16, #tpu.memory_space<vmem>>, vector<1x1x128x128xbf16>
    %87 = vector.shape_cast %86 : vector<1x1x128x128xbf16> to vector<128x128xbf16>
    %cst_102 = arith.constant dense<0.000000e+00> : vector<70x128xf32>
    %88 = tpu.matmul %85, %87, %cst_102 {dimension_numbers = #tpu.dot_dimension_numbers<[1], [0], [0], [1], [0, 0, 1, 1], [], []>} : vector<70x128xbf16>, vector<128x128xbf16>, vector<70x128xf32> -> vector<70x128xf32>
    %89 = arith.addf %84, %88 : vector<70x128xf32>
    %cst_103 = arith.constant 0.000000e+00 : f32
    %90 = vector.broadcast %cst_103 : f32 to vector<70x128xf32>
    %91 = arith.maximumf %89, %90 : vector<70x128xf32>
    %92 = vector.broadcast %23 : vector<70x1xf32> to vector<70x128xf32>
    %93 = arith.mulf %91, %92 : vector<70x128xf32>
    %94 = arith.truncf %93 : vector<70x128xf32> to vector<70x128xbf16>
    %c1_104 = arith.constant 1 : index
    %c0_105 = arith.constant 0 : index
    %95 = vector.load %arg7[%c1_104, %c0_105] : memref<72x128xbf16, #tpu.memory_space<vmem>>, vector<70x128xbf16>
    tpu.vector_store %arg7[%c1_104, %c0_105], %94 {strides = array<i32>} : memref<72x128xbf16, #tpu.memory_space<vmem>>, vector<70x128xbf16>,
    %c0_106 = arith.constant 0 : index
    %c0_107 = arith.constant 0 : index
    %96 = vector.load %arg7[%c0_106, %c0_107] : memref<72x128xbf16, #tpu.memory_space<vmem>>, vector<70x128xbf16>
    %c3_108 = arith.constant 3 : index
    %c0_109 = arith.constant 0 : index
    %c0_110 = arith.constant 0 : index
    %c0_111 = arith.constant 0 : index
    %97 = vector.load %arg2[%c3_108, %c0_109, %c0_110, %c0_111] : memref<5x3x128x128xbf16, #tpu.memory_space<vmem>>, vector<1x1x128x128xbf16>
    %98 = vector.shape_cast %97 : vector<1x1x128x128xbf16> to vector<128x128xbf16>
    %cst_112 = arith.constant dense<0.000000e+00> : vector<70x128xf32>
    %99 = tpu.matmul %96, %98, %cst_112 {dimension_numbers = #tpu.dot_dimension_numbers<[1], [0], [0], [1], [0, 0, 1, 1], [], []>} : vector<70x128xbf16>, vector<128x128xbf16>, vector<70x128xf32> -> vector<70x128xf32>
    %c3_113 = arith.constant 3 : index
    %c0_114 = arith.constant 0 : index
    %c0_115 = arith.constant 0 : index
    %100 = vector.load %arg3[%c3_113, %c0_114, %c0_115] : memref<5x1x128xf32, #tpu.memory_space<vmem>>, vector<1x1x128xf32>
    %101 = vector.shape_cast %100 : vector<1x1x128xf32> to vector<1x128xf32>
    %102 = vector.broadcast %101 : vector<1x128xf32> to vector<70x128xf32>
    %103 = arith.addf %99, %102 : vector<70x128xf32>
    %c1_116 = arith.constant 1 : index
    %c0_117 = arith.constant 0 : index
    %104 = vector.load %arg7[%c1_116, %c0_117] : memref<72x128xbf16, #tpu.memory_space<vmem>>, vector<70x128xbf16>
    %c3_118 = arith.constant 3 : index
    %c1_119 = arith.constant 1 : index
    %c0_120 = arith.constant 0 : index
    %c0_121 = arith.constant 0 : index
    %105 = vector.load %arg2[%c3_118, %c1_119, %c0_120, %c0_121] : memref<5x3x128x128xbf16, #tpu.memory_space<vmem>>, vector<1x1x128x128xbf16>
    %106 = vector.shape_cast %105 : vector<1x1x128x128xbf16> to vector<128x128xbf16>
    %cst_122 = arith.constant dense<0.000000e+00> : vector<70x128xf32>
    %107 = tpu.matmul %104, %106, %cst_122 {dimension_numbers = #tpu.dot_dimension_numbers<[1], [0], [0], [1], [0, 0, 1, 1], [], []>} : vector<70x128xbf16>, vector<128x128xbf16>, vector<70x128xf32> -> vector<70x128xf32>
    %108 = arith.addf %103, %107 : vector<70x128xf32>
    %c2_123 = arith.constant 2 : index
    %c0_124 = arith.constant 0 : index
    %109 = vector.load %arg7[%c2_123, %c0_124] : memref<72x128xbf16, #tpu.memory_space<vmem>>, vector<70x128xbf16>
    %c3_125 = arith.constant 3 : index
    %c2_126 = arith.constant 2 : index
    %c0_127 = arith.constant 0 : index
    %c0_128 = arith.constant 0 : index
    %110 = vector.load %arg2[%c3_125, %c2_126, %c0_127, %c0_128] : memref<5x3x128x128xbf16, #tpu.memory_space<vmem>>, vector<1x1x128x128xbf16>
    %111 = vector.shape_cast %110 : vector<1x1x128x128xbf16> to vector<128x128xbf16>
    %cst_129 = arith.constant dense<0.000000e+00> : vector<70x128xf32>
    %112 = tpu.matmul %109, %111, %cst_129 {dimension_numbers = #tpu.dot_dimension_numbers<[1], [0], [0], [1], [0, 0, 1, 1], [], []>} : vector<70x128xbf16>, vector<128x128xbf16>, vector<70x128xf32> -> vector<70x128xf32>
    %113 = arith.addf %108, %112 : vector<70x128xf32>
    %cst_130 = arith.constant 0.000000e+00 : f32
    %114 = vector.broadcast %cst_130 : f32 to vector<70x128xf32>
    %115 = arith.maximumf %113, %114 : vector<70x128xf32>
    %116 = vector.broadcast %23 : vector<70x1xf32> to vector<70x128xf32>
    %117 = arith.mulf %115, %116 : vector<70x128xf32>
    %118 = arith.truncf %117 : vector<70x128xf32> to vector<70x128xbf16>
    %c1_131 = arith.constant 1 : index
    %c0_132 = arith.constant 0 : index
    %119 = vector.load %arg8[%c1_131, %c0_132] : memref<72x128xbf16, #tpu.memory_space<vmem>>, vector<70x128xbf16>
    tpu.vector_store %arg8[%c1_131, %c0_132], %118 {strides = array<i32>} : memref<72x128xbf16, #tpu.memory_space<vmem>>, vector<70x128xbf16>,
    %c0_133 = arith.constant 0 : index
    %c0_134 = arith.constant 0 : index
    %120 = vector.load %arg8[%c0_133, %c0_134] : memref<72x128xbf16, #tpu.memory_space<vmem>>, vector<70x128xbf16>
    %c4 = arith.constant 4 : index
    %c0_135 = arith.constant 0 : index
    %c0_136 = arith.constant 0 : index
    %c0_137 = arith.constant 0 : index
    %121 = vector.load %arg2[%c4, %c0_135, %c0_136, %c0_137] : memref<5x3x128x128xbf16, #tpu.memory_space<vmem>>, vector<1x1x128x128xbf16>
    %122 = vector.shape_cast %121 : vector<1x1x128x128xbf16> to vector<128x128xbf16>
    %cst_138 = arith.constant dense<0.000000e+00> : vector<70x128xf32>
    %123 = tpu.matmul %120, %122, %cst_138 {dimension_numbers = #tpu.dot_dimension_numbers<[1], [0], [0], [1], [0, 0, 1, 1], [], []>} : vector<70x128xbf16>, vector<128x128xbf16>, vector<70x128xf32> -> vector<70x128xf32>
    %c4_139 = arith.constant 4 : index
    %c0_140 = arith.constant 0 : index
    %c0_141 = arith.constant 0 : index
    %124 = vector.load %arg3[%c4_139, %c0_140, %c0_141] : memref<5x1x128xf32, #tpu.memory_space<vmem>>, vector<1x1x128xf32>
    %125 = vector.shape_cast %124 : vector<1x1x128xf32> to vector<1x128xf32>
    %126 = vector.broadcast %125 : vector<1x128xf32> to vector<70x128xf32>
    %127 = arith.addf %123, %126 : vector<70x128xf32>
    %c1_142 = arith.constant 1 : index
    %c0_143 = arith.constant 0 : index
    %128 = vector.load %arg8[%c1_142, %c0_143] : memref<72x128xbf16, #tpu.memory_space<vmem>>, vector<70x128xbf16>
    %c4_144 = arith.constant 4 : index
    %c1_145 = arith.constant 1 : index
    %c0_146 = arith.constant 0 : index
    %c0_147 = arith.constant 0 : index
    %129 = vector.load %arg2[%c4_144, %c1_145, %c0_146, %c0_147] : memref<5x3x128x128xbf16, #tpu.memory_space<vmem>>, vector<1x1x128x128xbf16>
    %130 = vector.shape_cast %129 : vector<1x1x128x128xbf16> to vector<128x128xbf16>
    %cst_148 = arith.constant dense<0.000000e+00> : vector<70x128xf32>
    %131 = tpu.matmul %128, %130, %cst_148 {dimension_numbers = #tpu.dot_dimension_numbers<[1], [0], [0], [1], [0, 0, 1, 1], [], []>} : vector<70x128xbf16>, vector<128x128xbf16>, vector<70x128xf32> -> vector<70x128xf32>
    %132 = arith.addf %127, %131 : vector<70x128xf32>
    %c2_149 = arith.constant 2 : index
    %c0_150 = arith.constant 0 : index
    %133 = vector.load %arg8[%c2_149, %c0_150] : memref<72x128xbf16, #tpu.memory_space<vmem>>, vector<70x128xbf16>
    %c4_151 = arith.constant 4 : index
    %c2_152 = arith.constant 2 : index
    %c0_153 = arith.constant 0 : index
    %c0_154 = arith.constant 0 : index
    %134 = vector.load %arg2[%c4_151, %c2_152, %c0_153, %c0_154] : memref<5x3x128x128xbf16, #tpu.memory_space<vmem>>, vector<1x1x128x128xbf16>
    %135 = vector.shape_cast %134 : vector<1x1x128x128xbf16> to vector<128x128xbf16>
    %cst_155 = arith.constant dense<0.000000e+00> : vector<70x128xf32>
    %136 = tpu.matmul %133, %135, %cst_155 {dimension_numbers = #tpu.dot_dimension_numbers<[1], [0], [0], [1], [0, 0, 1, 1], [], []>} : vector<70x128xbf16>, vector<128x128xbf16>, vector<70x128xf32> -> vector<70x128xf32>
    %137 = arith.addf %132, %136 : vector<70x128xf32>
    %138 = vector.extract_strided_slice %137 {offsets = [0, 0], sizes = [16, 128], strides = [1, 1]} : vector<70x128xf32> to vector<16x128xf32>
    %c0_156 = arith.constant 0 : index
    %c0_157 = arith.constant 0 : index
    %c0_158 = arith.constant 0 : index
    %139 = vector.load %arg5[%c0_156, %c0_157, %c0_158] : memref<4x16x128xf32, #tpu.memory_space<vmem>>, vector<1x16x128xf32>
    %140 = vector.shape_cast %139 : vector<1x16x128xf32> to vector<16x128xf32>
    %141 = vector.shape_cast %138 : vector<16x128xf32> to vector<1x16x128xf32>
    tpu.vector_store %arg5[%c0_156, %c0_157, %c0_158], %141 {strides = array<i32>} : memref<4x16x128xf32, #tpu.memory_space<vmem>>, vector<1x16x128xf32>,
    %142 = vector.extract_strided_slice %137 {offsets = [18, 0], sizes = [16, 128], strides = [1, 1]} : vector<70x128xf32> to vector<16x128xf32>
    %c1_159 = arith.constant 1 : index
    %c0_160 = arith.constant 0 : index
    %c0_161 = arith.constant 0 : index
    %143 = vector.load %arg5[%c1_159, %c0_160, %c0_161] : memref<4x16x128xf32, #tpu.memory_space<vmem>>, vector<1x16x128xf32>
    %144 = vector.shape_cast %143 : vector<1x16x128xf32> to vector<16x128xf32>
    %145 = vector.shape_cast %142 : vector<16x128xf32> to vector<1x16x128xf32>
    tpu.vector_store %arg5[%c1_159, %c0_160, %c0_161], %145 {strides = array<i32>} : memref<4x16x128xf32, #tpu.memory_space<vmem>>, vector<1x16x128xf32>,
    %146 = vector.extract_strided_slice %137 {offsets = [36, 0], sizes = [16, 128], strides = [1, 1]} : vector<70x128xf32> to vector<16x128xf32>
    %c2_162 = arith.constant 2 : index
    %c0_163 = arith.constant 0 : index
    %c0_164 = arith.constant 0 : index
    %147 = vector.load %arg5[%c2_162, %c0_163, %c0_164] : memref<4x16x128xf32, #tpu.memory_space<vmem>>, vector<1x16x128xf32>
    %148 = vector.shape_cast %147 : vector<1x16x128xf32> to vector<16x128xf32>
    %149 = vector.shape_cast %146 : vector<16x128xf32> to vector<1x16x128xf32>
    tpu.vector_store %arg5[%c2_162, %c0_163, %c0_164], %149 {strides = array<i32>} : memref<4x16x128xf32, #tpu.memory_space<vmem>>, vector<1x16x128xf32>,
    %150 = vector.extract_strided_slice %137 {offsets = [54, 0], sizes = [16, 128], strides = [1, 1]} : vector<70x128xf32> to vector<16x128xf32>
    %c3_165 = arith.constant 3 : index
    %c0_166 = arith.constant 0 : index
    %c0_167 = arith.constant 0 : index
    %151 = vector.load %arg5[%c3_165, %c0_166, %c0_167] : memref<4x16x128xf32, #tpu.memory_space<vmem>>, vector<1x16x128xf32>
    %152 = vector.shape_cast %151 : vector<1x16x128xf32> to vector<16x128xf32>
    %153 = vector.shape_cast %150 : vector<16x128xf32> to vector<1x16x128xf32>
    tpu.vector_store %arg5[%c3_165, %c0_166, %c0_167], %153 {strides = array<i32>} : memref<4x16x128xf32, #tpu.memory_space<vmem>>, vector<1x16x128xf32>,
    return
  }
  func.func @transform_0(%arg0: i32) -> (i32, i32, i32) {
    %c0_i32 = arith.constant 0 : i32
    %c0_i32_0 = arith.constant 0 : i32
    %c0_i32_1 = arith.constant 0 : i32
    return %arg0, %c0_i32, %c0_i32_0 : i32, i32, i32
  }
  func.func @transform_1(%arg0: i32) -> (i32, i32, i32, i32) {
    %c0_i32 = arith.constant 0 : i32
    %c0_i32_0 = arith.constant 0 : i32
    %c0_i32_1 = arith.constant 0 : i32
    %c0_i32_2 = arith.constant 0 : i32
    %c0_i32_3 = arith.constant 0 : i32
    return %c0_i32, %c0_i32_0, %c0_i32_1, %c0_i32_2 : i32, i32, i32, i32
  }
  func.func @transform_2(%arg0: i32) -> (i32, i32, i32) {
    %c0_i32 = arith.constant 0 : i32
    %c0_i32_0 = arith.constant 0 : i32
    %c0_i32_1 = arith.constant 0 : i32
    %c0_i32_2 = arith.constant 0 : i32
    return %c0_i32, %c0_i32_0, %c0_i32_1 : i32, i32, i32
  }
  func.func @transform_3(%arg0: i32) -> (i32, i32) {
    %c0_i32 = arith.constant 0 : i32
    %c0_i32_0 = arith.constant 0 : i32
    %c0_i32_1 = arith.constant 0 : i32
    return %c0_i32, %c0_i32_0 : i32, i32
  }
  func.func @transform_4(%arg0: i32) -> (i32, i32, i32) {
    %c0_i32 = arith.constant 0 : i32
    %c0_i32_0 = arith.constant 0 : i32
    %c0_i32_1 = arith.constant 0 : i32
    return %arg0, %c0_i32, %c0_i32_0 : i32, i32, i32
  }
}

</mosaic_0001>

<bundles_post_ra>
// kernel: tpu_custom_call.1
= control target key start
LH: loop header
LB: loop body
LE: loop exit
PB: predicated region body
PF: predicated region fallthrough
CT: control target
= control target key end

     0   :  { %9 = vsyncpa [#allocation6], 0  ;;  %s6522_s0 = inlined_call_operand.vmem [shape: f32[8,16,7], index: 0, kind: input, shape index: {}]   ;;  %s6523_s1 = inlined_call_operand.hbm [shape: bf16[5,3,128,128], index: 1, kind: input, shape index: {}]   ;;  %s6524_s2 = inlined_call_operand.vmem [shape: f32[5,1,128], index: 2, kind: input, shape index: {}]   ;;  %s6525_s3 = inlined_call_operand.vmem [shape: f32[70,1], index: 3, kind: input, shape index: {}]   ;;  %s6526_s4 = inlined_call_operand.hbm [shape: f32[8,16,128], index: 4, kind: output, shape index: {}]  }
   0x1   :  { %10 = vsyncpa [#allocation7], 0 }
   0x2   :  { %12 = vsyncpa [#allocation7 + $0x1], 0  ;;  %s5481_s15 = smov 0   ;;  %s5483_s16 = smov 0  }
   0x3   :  { %s5485_s17 = smov 0   ;;  %s5487_s18 = smov 0  }
   0x4 LB: > { %s5502_s19 = sadd.s32 4294967295, %s5445_s18   ;;  %s3872_s20 = sadd.s32 4294967294, %s5445_s18   ;;  %s5445_s18 = sphi %s5487_s18, %s6579_s18   ;;  %s5441_s17 = sphi %s5485_s17, %s6578_s17   ;;  %s5437_s16 = sphi %s5483_s16, %s6577_s16   ;;  %s5433_s15 = sphi %s5481_s15, %s6576_s15  }
   0x5   : > { %s5506_s21 = sadd.s32 1, %s5445_s18   ;;  %s114_s22 = sadd.s32 1, %s5441_s17 }
   0x6   : > { %s111_s23 = ssub.s32 %s5445_s18, %s5506_s21  ;;  %p124_p0 = scmp.ne.s32.totalorder %s5441_s17, %s5437_s16 }
   0x7   : > { %p112_p1 = scmp.eq.s32.totalorder %s111_s23, 0  ;;  %p125_p2 = scmp.eq.s32.totalorder %s5502_s19, 1 }
   0x8   : > { %p130_p3 = scmp.ne.s32.totalorder %s5437_s16, %s5433_s15  ;;  %p131_p4 = scmp.eq.s32.totalorder %s3872_s20, 1 }
   0x9   : > { %s5517_s24 = scalar_select %p112_p1, %s5441_s17, %s114_s22  }
   0xa   : > { %p5519_p5 = por %p125_p2, %p124_p0  ;;  %p5523_p6 = por %p131_p4, %p130_p3 }
   0xb   : > { %p3873_p7 = scmp.ge.s32.totalorder %s5445_s18, 1  ;;  %p138_p8 = scmp.lt.s32.totalorder %s5445_s18, 3 }
   0xc   : > { %s6533_s25 = scalar_select %p5519_p5, 1, 0 }
   0xd   : > { %s6534_s26 = scalar_select %p5523_p6, 1, 0 }
   0xe   : > { %p6527_p9 = scmp.eq.s32.totalorder %s5502_s19, 0  ;;  %p5530_p10 = pnand %p3873_p7, %p138_p8 }
   0xf   : > { %s5447_s28 = smov [#allocation5]   ;;  %s5351_s7 = scalar_lea.hbm %s6523_s1, 15360 }
  0x10   : > { %s6535_s27 = scalar_select %p5530_p10, 1, 0 }
  0x11   : > { %s150_s29 = sshll.u32 %s5447_s28, 4  ;;  %p5144_p11 = pneg %p5530_p10  ;;  %s151_s29 = int_to_ptr.vmem [resolvable:$true] %s150_s29 }
  0x12   : > { %p5352_p13 = scmp.ne.s32.totalorder %s6523_s1, %s5351_s7  ;;  %p5358_p3 = scmp.lt.u32.totalorder %s5351_s7, %s6523_s1 }
  0x13   : > { %p5538_p12 = pnand %p6527_p9, %p5144_p11 }
  0x15   : > { %p5353_p0 = pneg %p5538_p12 }
  0x17   : > { %p5354_p1 = pnand %p5353_p0, %p5352_p13 }
  0x19   : > { %p5355_p2 = pneg %p5354_p1 }
  0x1b   : > { %p5360_p4 = pnand %p5358_p3, %p5355_p2 }
  0x1d   : > { %5363 = shalt.err (!%p5360_p4)
}
  0x1e   : > { %s5364_s12 = scalar_lea.vmem %s151_s29, 15360  ;;  %p5372_p9 = scmp.lt.s32.totalorder %s151_s29, %s151_s29 }
  0x1f   : > { %p5365_p7 = scmp.ne.s32.totalorder %s151_s29, %s5364_s12  ;;  %p5373_p6 = scmp.lt.s32.totalorder %s5364_s12, %s5364_s12 }
  0x21   : > { %p5367_p8 = pnand %p5365_p7, %p5353_p0  ;;  %p5374_p5 = por %p5373_p6, %p5372_p9 }
  0x23   : > { %p5368_p11 = pneg %p5367_p8 }
  0x25   : > { %p5375_p10 = pnand %p5374_p5, %p5368_p11 }
  0x27   : > { %5378 = shalt.err (!%p5375_p10)
}
  0x28   : > { %s5448_s13 = smov 64   ;;  %s5449_s14 = smov 4  }
  0x29   : > { %5147 = dma.hbm_to_vmem [thread:$0]  (!%p5538_p12), %s6523_s1, 15360, %s151_s29, [#allocation6], %s5448_s13, %s5448_s13, %s5449_s14  }
  0x2a   : > { %p6537_p13 = scmp.ne.s32.totalorder %s6535_s27, 0 }
  0x2b   : > { %p6538_p1 = scmp.eq.s32.totalorder (!%p6537_p13), %s5502_s19, 0 }
  0x2c   : > { %182 = sbr.rel (%p6537_p13) target bundleno = 1650 (0x672), region = 36 }
  0x33   : > { %5424 = dma.done.wait (%p6538_p1), [#allocation6], 15360   ;;  %p6539_p0 = pmov %p6538_p1 }
  0x34   : > { %s3879_s23 = sshll.u32 %s5502_s19, 2  ;;  %v5450_v0 = vmov 0.0   ;;  %vm6530_vm0 = vmmov 0   ;;  %v5452_v1 = vmov 0   ;;  %vm235_vm1 = vsmask.f32 256 }
  0x35   : > { %5426 = vsyncadd (%p6539_p0), [#allocation6], 4294951936  ;;  %4389 = vmatprep.subr.bf16.mxu0 %v5450_v0  ;;  %4405 = vmatprep.mubr.msk.bf16.mxu0 %vm6530_vm0, %v5450_v0  ;;  %p5568_p5 = scmp.lt.s32.totalorder %s3879_s23, 7  ;;  %218 = vst [vmem:[#allocation2] sm:$0xf] %v5452_v1  ;;  %v5197_v2 = vld [vmem:[#allocation5 + $0x40] sm:$0xff]  }
  0x36   : > { %219 = vst [vmem:[#allocation2 + $0x4] sm:$0xf] %v5452_v1  ;;  %220 = vst [vmem:[#allocation2 + $0x8] sm:$0xf] %v5452_v1  ;;  %4353 = vmatprep.subr.bf16.mxu1 %v5450_v0  ;;  %4369 = vmatprep.mubr.msk.bf16.mxu1 %vm6530_vm0, %v5450_v0  ;;  %vm236_vm2 = vsmask.f32 4368 }
  0x37   : > { %221 = vst [vmem:[#allocation2 + $0xc] sm:$0xf] %v5452_v1  ;;  %222 = vst [vmem:[#allocation2 + $0x10] sm:$0xf] %v5452_v1  ;;  %5195 = vset.pattern.permute.xlu0 %v5452_v1  ;;  %5196 = vset.pattern.permute.xlu1 %v5452_v1  ;;  %s6581_s23 = smov (!%p5568_p5, %s3879_s23), 7  ;;  %v5198_v3 = vld [vmem:[#allocation5 + $0x48] sm:$0xff]  }
  0x38   : > { %223 = vst [vmem:[#allocation2 + $0x14] sm:$0xf] %v5452_v1  ;;  %224 = vst [vmem:[#allocation2 + $0x18] sm:$0xf] %v5452_v1  ;;  %4390 = vmatpush3.bf16.msra.mxu0 %v5197_v2  ;;  %s4111_s27 = sshll.u32 %s6581_s23, 4  ;;  %vm258_vm3 = vcmask 52224  }
  0x39   : > { %225 = vst [vmem:[#allocation2 + $0x1c] sm:$0xf] %v5452_v1  ;;  %226 = vst [vmem:[#allocation2 + $0x20] sm:$0xf] %v5452_v1  ;;  %4391 = vmatprep.subr.bf16.mxu0 %v5450_v0  ;;  %vm6532_vm4 = vsmask.f32 7938  ;;  %s5581_s5 = scalar_lea.vmem %s6522_s0, %s4111_s27 }
  0x3a   : > { %vm280_vm5 = vsmask.f32 1280  ;;  %v5199_v4 = vld [vmem:[#allocation5 + $0x50] sm:$0xff]   ;;  %vm266_vm6 = vcmask 49152   ;;  %vm281_vm7 = vsmask.f32 5392  ;;  %vm5588_vm11 = vmor %vm235_vm1, %vm236_vm2 }
  0x3b   : > { %v227_v5 = vld [vmem:[%s5581_s5] sm:$0xff]  ;;  %v228_v6 = vld [vmem:[%s5581_s5 + $0x8] sm:$0xff]  ;;  %vm305_vm8 = vcmask 52225   ;;  %vm306_vm9 = vsmask.f32 7942  ;;  %vm312_vm10 = vcmask 50176   ;;  %vm5597_vm2 = vmand %vm258_vm3, %vm6532_vm4 }
  0x3c   : > { %4392 = vmatpush3.bf16.msra.mxu0 %v5198_v3  ;;  %v4112_v7 = vpack.c.bf16 %v227_v5, %v227_v5  ;;  %v4113_v8 = vpack.c.bf16 %v228_v6, %v228_v6  ;;  %v3884_v10 = vld [vmem:[%s5581_s5 + $0x10] sm:$0xff]  ;;  %v3885_v11 = vld [vmem:[%s5581_s5 + $0x18] sm:$0xff]  ;;  %vm326_vm12 = vsmask.f32 2304  ;;  %vm327_vm13 = vsmask.f32 6416  ;;  %vm5603_vm0 = vmand %vm266_vm6, %vm235_vm1 }
  0x3d   : > { %4393 = vmatprep.subr.bf16.mxu0 %v5450_v0  ;;  %v5200_v12 = vld [vmem:[#allocation5 + $0x58] sm:$0xff]   ;;  %v4114_v13 = vpack.c.bf16 %v3884_v10, %v3884_v10  ;;  %v4115_v14 = vpack.c.bf16 %v3885_v11, %v3885_v11  ;;  %vm352_vm15 = vsmask.f32 7946  ;;  %v5208_v20 = vld [vmem:[#allocation5] sm:$0xff]   ;;  %v261_v22 = vld [vmem:[#allocation2] sm:$0xf] }
  0x3e   : > { %v239_v15 = vshrl.u32 %v4112_v7, 16  ;;  %v242_v16 = vshll.u32 %v4112_v7, 16  ;;  %v247_v17 = vshrl.u32 %v4113_v8, 16  ;;  %v250_v18 = vshll.u32 %v4113_v8, 16  ;;  %v5201_v21 = vld [vmem:[#allocation5 + $0x60] sm:$0xff]   ;;  %vm5609_vm4 = vmor %vm280_vm5, %vm281_vm7  ;;  %4354 = vmatpush3.bf16.msra.mxu1 %v5208_v20  ;;  %v3888_v43 = vld [vmem:[%s5581_s5 + $0x20] sm:$0xff] }
  0x3f   : > { %v268_v24 = vld [vmem:[#allocation2 + $0x8] sm:$0x1]  ;;  %v284_v25 = vshrl.u32 %v4114_v13, 16  ;;  %v287_v26 = vshll.u32 %v4114_v13, 16  ;;  %v293_v27 = vshrl.u32 %v4115_v14, 16  ;;  %v296_v28 = vshll.u32 %v4115_v14, 16  ;;  %vm5615_vm6 = vmand %vm305_vm8, %vm306_vm9  ;;  %4355 = vmatprep.subr.bf16.mxu1 %v5450_v0 }
  0x40   : > { %4394 = vmatpush3.bf16.msra.mxu0 %v5199_v4  ;;  %vm358_vm14 = vcmask 51200   ;;  %v241_v29 = vrot.slane %v239_v15, 7  ;;  %v249_v30 = vrot.slane %v247_v17, 7  ;;  %v308_v41 = vld [vmem:[#allocation2 + $0x8] sm:$0xe]  ;;  %vm5623_vm7 = vmand %vm312_vm10, %vm280_vm5  ;;  %v4116_v48 = vpack.c.bf16 %v3888_v43, %v3888_v43  ;;  %v5211_v53 = vld [vmem:[#allocation5 + $0x8] sm:$0xff]  }
  0x41   : > { %4395 = vmatprep.subr.bf16.mxu0 %v5450_v0  ;;  %v286_v32 = vrot.slane %v284_v25, 6  ;;  %v289_v33 = vrot.slane %v287_v26, 7  ;;  %v295_v34 = vrot.slane %v293_v27, 6  ;;  %v298_v35 = vrot.slane %v296_v28, 7  ;;  %v314_v46 = vld [vmem:[#allocation2 + $0x10] sm:$0x3] }
  0x42   : > { %v244_v37 = vor.u32 %v242_v16, %v241_v29  ;;  %v245_v38 = vrot.slane %v241_v29, 4  ;;  %v252_v39 = vor.u32 %v250_v18, %v249_v30  ;;  %v254_v40 = vrot.slane %v249_v30, 4  ;;  %v3889_v47 = vld [vmem:[%s5581_s5 + $0x28] sm:$0xff]  ;;  %v5202_v54 = vld [vmem:[#allocation5 + $0x68] sm:$0xff]   ;;  %4356 = vmatpush3.bf16.msra.mxu1 %v5211_v53  ;;  %v5213_v62 = vld [vmem:[#allocation5 + $0x10] sm:$0xff]   ;;  %s206_s20 = sand.u32 1, %s5437_s16  }
  0x43   : > { %v290_v44 = vor.u32 %v289_v33, %v286_v32  ;;  %v299_v45 = vor.u32 %v298_v35, %v295_v34  ;;  %vm397_vm8 = vcmask 52227   ;;  %v4117_v52 = vpack.c.bf16 %v3889_v47, %v3889_v47  ;;  %v5203_v63 = vld [vmem:[#allocation5 + $0x70] sm:$0xff]   ;;  %4357 = vmatprep.subr.bf16.mxu1 %v5450_v0  ;;  %v3892_v5 = vld [vmem:[%s5581_s5 + $0x30] sm:$0xff]  ;;  %v360_v14 = vld [vmem:[#allocation2 + $0x18] sm:$0x7]  ;;  %s3878_s28 = sshll.u32 %s206_s20, 6 }
  0x44   : > { %4396 = vmatpush3.bf16.msra.mxu0 %v5200_v12  ;;  %v253_v49 = vsel %vm5588_vm11, %v245_v38, %v252_v39  ;;  %v262_v50 = vsel %vm5597_vm2, %v244_v37, %v261_v22  ;;  %v269_v51 = vsel %vm5603_vm0, %v254_v40, %v268_v24  ;;  %v330_v58 = vshrl.u32 %v4116_v48, 16  ;;  %vm5645_vm0 = vmor %vm326_vm12, %vm327_vm13  ;;  %v354_v11 = vld [vmem:[#allocation2 + $0x10] sm:$0xc]  ;;  %v3893_v12 = vld [vmem:[%s5581_s5 + $0x38] sm:$0xff]  ;;  %s6457_s27 = scalar_lea.vmem [#allocation8], %s3878_s28  ;;  %s4157_s29 = sshll.u32 %s5502_s19, 10 }
  0x45   : > { %4397 = vmatprep.subr.bf16.mxu0 %v5450_v0  ;;  %263 = vst [vmem:[#allocation2] sm:$0xf] %v262_v50  ;;  %265 = vst.msk [vmem:[#allocation2 + $0x4] sm:$0xf] %vm258_vm3, %v253_v49  ;;  %v291_v55 = vrot.slane %v290_v44, 4  ;;  %v309_v56 = vsel %vm5615_vm6, %v290_v44, %v308_v41  ;;  %v301_v57 = vrot.slane %v299_v45, 4  ;;  %v4118_v13 = vpack.c.bf16 %v3892_v5, %v3892_v5  ;;  %s6472_s7 = scalar_lea.hbm %s6526_s4, %s4157_s29 }
  0x46   : > { %270 = vst [vmem:[#allocation2 + $0x8] sm:$0x1] %v269_v51  ;;  %vm372_vm5 = vsmask.f32 3328  ;;  %vm373_vm9 = vsmask.f32 7440  ;;  %v4119_v15 = vpack.c.bf16 %v3893_v12, %v3893_v12  ;;  %4358 = vmatpush3.bf16.msra.mxu1 %v5213_v62  ;;  %vm5662_vm13 = vmand %vm358_vm14, %vm326_vm12 }
  0x47   : > { %310 = vst [vmem:[#allocation2 + $0x8] sm:$0xe] %v309_v56  ;;  %v333_v59 = vshll.u32 %v4116_v48, 16  ;;  %v339_v60 = vshrl.u32 %v4117_v52, 16  ;;  %v342_v61 = vshll.u32 %v4117_v52, 16  ;;  %v300_v1 = vsel %vm5609_vm4, %v291_v55, %v299_v45  ;;  %4359 = vmatprep.subr.bf16.mxu1 %v5450_v0  ;;  %v5216_v23 = vld [vmem:[#allocation5 + $0x18] sm:$0xff]   ;;  %vm404_vm6 = vmand %vm258_vm3, %vm372_vm5 }
  0x48   : > { %4398 = vmatpush3.bf16.msra.mxu0 %v5201_v21  ;;  %v315_v2 = vsel %vm5623_vm7, %v301_v57, %v314_v46  ;;  %v332_v4 = vrot.slane %v330_v58, 5  ;;  %vm398_vm10 = vsmask.f32 7950  ;;  %311 = vst.msk [vmem:[#allocation2 + $0xc] sm:$0xf] %vm258_vm3, %v300_v1  ;;  %vm6555_vm4 = vcmask 52226  }
  0x49   : > { %4399 = vmatprep.subr.bf16.mxu0 %v5450_v0  ;;  %316 = vst [vmem:[#allocation2 + $0x10] sm:$0x3] %v315_v2  ;;  %v335_v6 = vrot.slane %v333_v59, 6  ;;  %v341_v7 = vrot.slane %v339_v60, 5  ;;  %v344_v8 = vrot.slane %v342_v61, 6  ;;  %vm5654_vm2 = vmand %vm6555_vm4, %vm352_vm15  ;;  %v376_v19 = vshll.u32 %v4118_v13, 16 }
  0x4a   : > { %v379_v20 = vshrl.u32 %v4118_v13, 16  ;;  %v400_v21 = vld [vmem:[#allocation2 + $0x18] sm:$0x8]  ;;  %v385_v22 = vshll.u32 %v4119_v15, 16  ;;  %vm5673_vm12 = vmand %vm397_vm8, %vm398_vm10  ;;  %v5204_v30 = vld [vmem:[#allocation5 + $0x78] sm:$0xff]   ;;  %4360 = vmatpush3.bf16.msra.mxu1 %v5216_v23  ;;  %v389_v38 = vshrl.u32 %v4119_v15, 16 }
  0x4b   : > { %v336_v16 = vor.u32 %v335_v6, %v332_v4  ;;  %v345_v17 = vor.u32 %v344_v8, %v341_v7  ;;  %v378_v32 = vrot.slane %v376_v19, 5  ;;  %v5217_v37 = vld [vmem:[#allocation5 + $0x20] sm:$0xff]   ;;  %4361 = vmatprep.subr.bf16.mxu1 %v5450_v0  ;;  %vm634_vm14 = vsmask.f32 7424  ;;  %vm5695_vm15 = vmor %vm372_vm5, %vm373_vm9  ;;  %v405_v50 = vld [vmem:[#allocation2 + $0x20] sm:$0xf] }
  0x4c   : > { %4400 = vmatpush3.bf16.msra.mxu0 %v5202_v54  ;;  %v433_v24 = vld [vmem:[#allocation2] sm:$0xf]  ;;  %v5667_v25 = vld [vmem:[#allocation2 + $0x4] sm:$0xf]  ;;  %v381_v33 = vrot.slane %v379_v20, 4  ;;  %v387_v34 = vrot.slane %v385_v22, 5 }
  0x4d   : > { %4401 = vmatprep.subr.bf16.mxu0 %v5450_v0  ;;  %v337_v26 = vrot.slane %v336_v16, 4  ;;  %v355_v27 = vsel %vm5654_vm2, %v336_v16, %v354_v11  ;;  %v347_v28 = vrot.slane %v345_v17, 4  ;;  %v5678_v31 = vcombine.low %v433_v24, %v5667_v25  ;;  %v5207_v48 = vld [vmem:[#allocation5 + $0x80] sm:$0xff]   ;;  %v5220_v51 = vld [vmem:[#allocation5 + $0x28] sm:$0xff]   ;;  %v5222_v59 = vld [vmem:[#allocation5 + $0x30] sm:$0xff]   ;;  %s3798_s30 = sshll.u32 %s6457_s27, 4  ;;  %s6474_s30 = int_to_ptr.vmem [resolvable:$true] %s3798_s30 }
  0x4e   : > { %356 = vst [vmem:[#allocation2 + $0x10] sm:$0xc] %v355_v27  ;;  %v382_v42 = vor.u32 %v381_v33, %v378_v32  ;;  %v401_v43 = vsel %vm5673_vm12, %v378_v32, %v400_v21  ;;  %v391_v45 = vrot.slane %v389_v38, 4  ;;  %4362 = vmatpush3.bf16.msra.mxu1 %v5217_v37  ;;  %v5209_v62 = vld [vmem:[#allocation5 + $0x88] sm:$0xff]   ;;  %vm6564_vm7 = vmmov 0   ;;  %v424_v3 = vld [vmem:[%s6525_s3] sm:$0xff] }
  0x4f   : > { %v346_v35 = vsel %vm5645_vm0, %v337_v26, %v345_v17  ;;  %v361_v36 = vsel %vm5662_vm13, %v347_v28, %v360_v14  ;;  %v5685_v39 = vld [vmem:[#allocation2 + $0x8] sm:$0xff]   ;;  %v636_v40 = vshrl.u32 %v5678_v31, 16  ;;  %v638_v41 = vshll.u32 %v5678_v31, 16  ;;  %402 = vst [vmem:[#allocation2 + $0x18] sm:$0x8] %v401_v43  ;;  %4363 = vmatprep.subr.bf16.mxu1 %v5450_v0  ;;  %984 = vperm.xlu0 %5195, %v424_v3   ;;  %v426_v4 = vld [vmem:[%s6525_s3 + $0x10] sm:$0xff] }
  0x50   : > { %4402 = vmatpush3.bf16.msra.mxu0 %v5203_v63  ;;  %357 = vst.msk [vmem:[#allocation2 + $0x14] sm:$0xf] %vm258_vm3, %v346_v35  ;;  %362 = vst [vmem:[#allocation2 + $0x18] sm:$0x7] %v361_v36  ;;  %v643_v47 = vshll.u32 %v5685_v39, 16  ;;  %v383_v49 = vrot.slane %v382_v42, 4  ;;  %v392_v52 = vor.u32 %v391_v45, %v387_v34  ;;  %994 = vperm.xlu1 %5196, %v426_v4  }
  0x51   : > { %4403 = vmatprep.subr.bf16.mxu0 %v5450_v0  ;;  %v640_v46 = vrot.slane %v638_v41, 1  ;;  %v647_v56 = vshrl.u32 %v5685_v39, 16  ;;  %v808_v2 = vld [vmem:[#allocation2] sm:$0xe]  ;;  %v5224_v6 = vld [vmem:[#allocation5 + $0x38] sm:$0xff]   ;;  %v831_v16 = vrot.slane %v5685_v39, 1 }
  0x52   : > { %v645_v54 = vrot.slane %v643_v47, 1  ;;  %v388_v55 = vsel %vm5695_vm15, %v383_v49, %v387_v34  ;;  %v393_v57 = vrot.slane %v392_v52, 4  ;;  %4364 = vmatpush3.bf16.msra.mxu1 %v5220_v51  ;;  %v425_v7 = vld [vmem:[%s6525_s3 + $0x8] sm:$0xff]  ;;  %v5212_v8 = vld [vmem:[#allocation5 + $0x90] sm:$0xff]   ;;  %v3919_v12 = vcombine.low %v808_v2, %v5667_v25  ;;  %v430_v29 = vld [vmem:[%s6525_s3 + $0x30] sm:$0xff]  ;;  %s6481_s19 = scalar_lea.sflag [#allocation7], %s206_s20 }
  0x53   : > { %v641_v53 = vor.u32 %v640_v46, %v636_v40  ;;  %403 = vst.msk [vmem:[#allocation2 + $0x1c] sm:$0xf] %vm258_vm3, %v388_v55  ;;  %4365 = vmatprep.subr.bf16.mxu1 %v5450_v0  ;;  %v5215_v15 = vld [vmem:[#allocation5 + $0x98] sm:$0xff]   ;;  %989 = vperm.xlu0 %5195, %v425_v7   ;;  %v427_v18 = vld [vmem:[%s6525_s3 + $0x18] sm:$0xff]  ;;  %v5227_v24 = vld [vmem:[#allocation5 + $0xc0] sm:$0xff]   ;;  %vm829_vm3 = vcmask 1046528  }
  0x54   : > { %4404 = vmatpush3.bf16.msra.mxu0 %v5204_v30  ;;  %v406_v61 = vsel %vm404_vm6, %v393_v57, %v405_v50  ;;  %v649_v63 = vor.u32 %v647_v56, %v645_v54  ;;  %v428_v17 = vld [vmem:[%s6525_s3 + $0x20] sm:$0xff]  ;;  %v830_v22 = vrot.slane %v3919_v12, 1  ;;  %999 = vperm.xlu1 %5196, %v427_v18   ;;  %v429_v30 = vld [vmem:[%s6525_s3 + $0x28] sm:$0xff]  ;;  %v431_v36 = vld [vmem:[%s6525_s3 + $0x38] sm:$0xff]  ;;  %vm408_vm8 = vcmask 1040384   ;;  %s5379_s8 = scalar_lea.vmem %s6474_s30, 1024 }
  0x55   : > { %4425 = vmatprep.subr.bf16.mxu0 %v5450_v0  ;;  %v646_v58 = vsel %vm634_vm14, %v641_v53, %v645_v54  ;;  %407 = vst [vmem:[#allocation2 + $0x20] sm:$0xf] %v406_v61  ;;  %v5218_v32 = vld [vmem:[#allocation5 + $0xa0] sm:$0xff]   ;;  %v5228_v37 = vld [vmem:[#allocation5 + $0xc8] sm:$0xff]   ;;  %v5223_v41 = vld [vmem:[#allocation5 + $0xb0] sm:$0xff]   ;;  %p5380_p6 = scmp.ne.s32.totalorder %s6474_s30, %s5379_s8  ;;  %p6574_p9 = scmp.ne.s32.totalorder %s6533_s25, 0 }
  0x56   : > { %4366 = vmatpush3.bf16.msra.mxu1 %v5222_v59  ;;  %v5221_v38 = vld [vmem:[#allocation5 + $0xa8] sm:$0xff]   ;;  %v5225_v43 = vld [vmem:[#allocation5 + $0xb8] sm:$0xff]   ;;  %v832_v45 = vsel %vm829_vm3, %v830_v22, %v831_v16  ;;  %v5229_v49 = vld [vmem:[#allocation5 + $0xd0] sm:$0xff]   ;;  %vm6569_vm4 = vsmask.f32 7938  ;;  %s5453_s9 = smov [#allocation8]  }
  0x57   : > { %4406 = vmatmul.mubr.bf16.vlgmr.msra.gmra.mrb[0].mxu0 %v646_v58  ;;  %v5709_v60 = vld [vmem:[#allocation2 + $0x10] sm:$0xff]   ;;  %4367 = vmatprep.subr.bf16.mxu1 %v5450_v0  ;;  %v410_v50 = vld [vmem:[#allocation3] sm:$0x1]  ;;  %vm5820_vm9 = vmand %vm408_vm8, %vm235_vm1  ;;  %vm413_vm1 = vcmask 1043459   ;;  %p5381_p10 = pnand %p5380_p6, %p6574_p9  ;;  %s5383_s10 = sshll.u32 %s5453_s9, 4  ;;  %s5384_s10 = int_to_ptr.vmem [resolvable:$false] %s5383_s10 }
  0x58   : > { %4426 = vmatpush3.bf16.msra.mxu0 %v5207_v48  ;;  %4409 = vmatprep.mubr.msk.bf16.mxu0 %vm6564_vm7, %v5450_v0  ;;  %v651_v1 = vshll.u32 %v5709_v60, 16  ;;  %v655_v11 = vshrl.u32 %v5709_v60, 16  ;;  %v833_v23 = vrot.slane %v5709_v60, 1  ;;  %v411_v52 = vsel %vm5820_vm9, 0, %v410_v50  ;;  %v5230_v53 = vld [vmem:[#allocation5 + $0xd8] sm:$0xff]   ;;  %v5231_v54 = vld [vmem:[#allocation5 + $0xe0] sm:$0xff]   ;;  %vm5833_vm0 = vmand %vm413_vm1, %vm398_vm10  ;;  %p5386_p2 = scmp.lt.s32.totalorder %s6474_s30, %s5384_s10 }
  0x59   : > { %4427 = vmatprep.subr.bf16.mxu0 %v5450_v0  ;;  %1004 = vperm.xlu0 %5195, %v428_v17   ;;  %412 = vst [vmem:[#allocation3] sm:$0x1] %v411_v52  ;;  %v5232_v55 = vld [vmem:[#allocation5 + $0xe8] sm:$0xff]   ;;  %v5233_v56 = vld [vmem:[#allocation5 + $0xf0] sm:$0xff]   ;;  %v5234_v57 = vld [vmem:[#allocation5 + $0xf8] sm:$0xff]   ;;  %vm1152_vm10 = vcmask 1043456   ;;  %p5382_p12 = pneg %p5381_p10 }
  0x5a   : > { %v653_v5 = vrot.slane %v651_v1, 1  ;;  %v5725_v10 = vld [vmem:[#allocation2 + $0x18] sm:$0xff]   ;;  %4368 = vmatpush3.bf16.msra.mxu1 %v5224_v6  ;;  %1009 = vperm.xlu1 %5196, %v429_v30   ;;  %v834_v47 = vsel %vm829_vm3, %v831_v16, %v833_v23  ;;  %v415_v59 = vld [vmem:[#allocation3 + $0x20] sm:$0x8]  ;;  %vm5864_vm2 = vmand %vm1152_vm10, %vm6569_vm4  ;;  %s5385_s11 = scalar_lea.vmem %s5384_s10, 2048 }
  0x5b   : > { %v659_v14 = vshll.u32 %v5725_v10, 16  ;;  %v663_v25 = vshrl.u32 %v5725_v10, 16  ;;  %v835_v28 = vrot.slane %v5725_v10, 1  ;;  %4461 = vmatprep.subr.bf16.mxu1 %v5450_v0  ;;  %vm5938_vm13 = vmand %vm1152_vm10, %vm372_vm5  ;;  %p5387_p3 = scmp.lt.s32.totalorder %s5385_s11, %s5379_s8 }
  0x5c   : > { %4428 = vmatpush3.bf16.msra.mxu0 %v5209_v62  ;;  %v654_v13 = vsel %vm634_vm14, %v649_v63, %v653_v5  ;;  %v5740_v19 = vld [vmem:[#allocation2 + $0x20] ss:$0 sps:$4 sm:$0xff]   ;;  %v657_v20 = vor.u32 %v655_v11, %v653_v5 }
  0x5d   : > { %4429 = vmatprep.subr.bf16.mxu0 %v5450_v0  ;;  %v661_v21 = vrot.slane %v659_v14, 1  ;;  %v667_v26 = vshll.u32 %v5740_v19, 16  ;;  %v671_v27 = vshrl.u32 %v5740_v19, 16  ;;  %4370 = vmatmul.mubr.bf16.vlgmr.msra.gmra.mrb[0].mxu1 %v5678_v31  ;;  %v837_v34 = vrot.slane %v5740_v19, 1  ;;  %v432_v31 = vld [vmem:[%s6525_s3 + $0x40] sm:$0x3f]  ;;  %p5388_p4 = por %p5387_p3, %p5386_p2 }
  0x5e   : > { %4373 = vmatprep.mubr.msk.bf16.mxu1 %vm6564_vm7, %v5450_v0  ;;  %4462 = vmatpush3.bf16.msra.mxu1 %v5227_v24  ;;  %v5226_v46 = vld [vmem:[#allocation2 + $0x20] ss:$0 sps:$4 sm:$0x77]   ;;  %v836_v48 = vsel %vm829_vm3, %v833_v23, %v835_v28 }
  0x5f   : > { %4410 = vmatmul.mubr.bf16.gmra.mrb[4].mxu0 %v654_v13  ;;  %v669_v33 = vrot.slane %v667_v26, 1  ;;  %v662_v35 = vsel %vm634_vm14, %v657_v20, %v661_v21  ;;  %1014 = vperm.xlu0 %5195, %v430_v29   ;;  %v665_v40 = vor.u32 %v663_v25, %v661_v21  ;;  %v5842_v11 = vld [vmem:[%s6524_s2] ss:$0 sm:$0xff]  ;;  %p5389_p7 = pnand %p5388_p4, %p5382_p12 }
  0x60   : > { %4430 = vmatpush3.bf16.msra.mxu0 %v5212_v8  ;;  %4413 = vmatprep.mubr.msk.bf16.mxu0 %vm6564_vm7, %v5450_v0  ;;  %v1154_v50 = vld [vmem:[#allocation3] sm:$0xf] }
  0x61   : > { %4431 = vmatprep.subr.bf16.mxu0 %v5450_v0  ;;  %4463 = vmatprep.subr.bf16.mxu1 %v5450_v0  ;;  %v670_v42 = vsel %vm634_vm14, %v665_v40, %v669_v33  ;;  %v673_v44 = vor.u32 %v671_v27, %v669_v33 }
  0x62   : > { %1019 = vperm.xlu1 %5196, %v431_v36   ;;  %4464 = vmatpush3.bf16.msra.mxu1 %v5228_v37 }
  0x63   : > { %1024 = vperm.xlu0 %5195, %v432_v31   ;;  %4465 = vmatprep.subr.bf16.mxu1 %v5450_v0 }
  0x64   : > { %4432 = vmatpush3.bf16.msra.mxu0 %v5215_v15 }
  0x65   : > { %4433 = vmatprep.subr.bf16.mxu0 %v5450_v0  ;;  %4374 = vmatmul.mubr.bf16.gmra.mrb[4].mxu1 %v5685_v39  ;;  %v838_v39 = vsel %vm829_vm3, %v835_v28, %v837_v34 }
  0x66   : > { %4377 = vmatprep.mubr.msk.bf16.mxu1 %vm6564_vm7, %v5450_v0  ;;  %4466 = vmatpush3.bf16.msra.mxu1 %v5229_v49 }
  0x67   : > { %4414 = vmatmul.mubr.bf16.gmra.mrb[8].mxu0 %v662_v35  ;;  %4467 = vmatprep.subr.bf16.mxu1 %v5450_v0 }
  0x68   : > { %4434 = vmatpush3.bf16.msra.mxu0 %v5218_v32  ;;  %4417 = vmatprep.mubr.msk.bf16.mxu0 %vm6564_vm7, %v5450_v0 }
  0x69   : > { %4435 = vmatprep.subr.bf16.mxu0 %v5450_v0 }
  0x6a   : > { %4468 = vmatpush3.bf16.msra.mxu1 %v5230_v53 }
  0x6b   : > { %4469 = vmatprep.subr.bf16.mxu1 %v5450_v0 }
  0x6c   : > { %4436 = vmatpush3.bf16.msra.mxu0 %v5221_v38 }
  0x6d   : > { %4437 = vmatprep.subr.bf16.mxu0 %v5450_v0  ;;  %4378 = vmatmul.mubr.bf16.gmra.mrb[8].mxu1 %v5709_v60  ;;  %v416_v60 = vsel %vm5833_vm0, 0, %v415_v59 }
  0x6e   : > { %4381 = vmatprep.mubr.msk.bf16.mxu1 %vm6564_vm7, %v5450_v0  ;;  %4470 = vmatpush3.bf16.msra.mxu1 %v5231_v54  ;;  %417 = vst [vmem:[#allocation3 + $0x20] sm:$0x8] %v416_v60  ;;  %v5258_v54 = vld [vmem:[#allocation5 + $0x180] sm:$0xff]   ;;  %v418_v60 = vld [vmem:[#allocation4] sm:$0x1] }
  0x6f   : > { %4418 = vmatmul.mubr.bf16.gmra.mrb[12].mxu0 %v670_v42  ;;  %4471 = vmatprep.subr.bf16.mxu1 %v5450_v0 }
  0x70   : > { %4421 = vmatprep.mubr.msk.bf16.mxu0 %vm6564_vm7, %v5450_v0  ;;  %4438 = vmatpush3.bf16.msra.mxu0 %v5223_v41 }
  0x71   : > { %4439 = vmatprep.subr.bf16.mxu0 %v5450_v0 }
  0x72   : > { %4472 = vmatpush3.bf16.msra.mxu1 %v5232_v55 }
  0x73   : > { %4473 = vmatprep.subr.bf16.mxu1 %v5450_v0 }
  0x74   : > { %4440 = vmatpush3.bf16.msra.mxu0 %v5225_v43 }
  0x75   : > { %4569 = vmatprep.subr.bf16.mxu0 %v5450_v0  ;;  %4382 = vmatmul.mubr.bf16.gmra.mrb[12].mxu1 %v5725_v10 }
  0x76   : > { %4385 = vmatprep.mubr.msk.bf16.mxu1 %vm6564_vm7, %v5450_v0  ;;  %4474 = vmatpush3.bf16.msra.mxu1 %v5233_v56 }
  0x77   : > { %4422 = vmatmul.mubr.bf16.gmra.mrb[16].mxu0 %v673_v44  ;;  %4475 = vmatprep.subr.bf16.mxu1 %v5450_v0 }
  0x78   : > { %4441 = vmatprep.mubr.msk.bf16.mxu0 %vm6564_vm7, %v5450_v0 }
  0x7a   : > { %4476 = vmatpush3.bf16.msra.mxu1 %v5234_v57 }
  0x7b   : > { %4497 = vmatprep.subr.bf16.mxu1 %v5450_v0 }
  0x7d   : > { %4386 = vmatmul.mubr.bf16.gmra.mrb[16].mxu1 %v5226_v46 }
  0x7e   : > { %4477 = vmatprep.mubr.msk.bf16.mxu1 %vm6564_vm7, %v5450_v0 }
  0x7f   : > { %4442 = vmatmul.mubr.bf16.vlgmr.msra.gmra.mrb[0].mxu0 %v832_v45 }
  0x80   : > { %4445 = vmatprep.mubr.msk.bf16.mxu0 %vm6564_vm7, %v5450_v0  ;;  %4570 = vmatpush3.bf16.msra.mxu0 %v5258_v54 }
  0x81   : > { %4571 = vmatprep.subr.bf16.mxu0 %v5450_v0 }
  0x87   : > { %4446 = vmatmul.mubr.bf16.gmra.mrb[4].mxu0 %v834_v47 }
  0x88   : > { %4449 = vmatprep.mubr.msk.bf16.mxu0 %vm6564_vm7, %v5450_v0 }
  0x8f   : > { %4450 = vmatmul.mubr.bf16.gmra.mrb[8].mxu0 %v836_v48 }
  0x90   : > { %4453 = vmatprep.mubr.msk.bf16.mxu0 %vm6564_vm7, %v5450_v0 }
  0x97   : > { %4454 = vmatmul.mubr.bf16.gmra.mrb[12].mxu0 %v838_v39 }
  0x98   : > { %4457 = vmatprep.mubr.msk.bf16.mxu0 %vm6564_vm7, %v5450_v0 }
  0x9f   : > { %4458 = vmatmul.mubr.bf16.gmra.mrb[16].mxu0 %v837_v34 }
  0xa0   : > { %4585 = vmatprep.mubr.msk.bf16.mxu0 %vm6564_vm7, %v5450_v0 }
  0xce   : > { %v5849_v17 = vpop.permute.xlu0 %984 }
  0xcf   : > { %v5860_v38 = vpop.permute.xlu1 %994 }
  0xd2   : > { %v5856_v33 = vpop.permute.xlu0 %989 }
 0x130   : > { %v575_v61 = vpop.f32.mrb[0].mxu1 }
 0x131   : > { %v4371_v62 = vpop.f32.mrb[1].mxu1  ;;  %v576_v14 = vadd.f32 %v5842_v11, %v575_v61 }
 0x132   : > { %v578_v63 = vpop.f32.mrb[2].mxu1 }
 0x133   : > { %v4372_v1 = vpop.f32.mrb[3].mxu1  ;;  %v579_v19 = vadd.f32 %v5842_v11, %v578_v63  ;;  %v5259_v63 = vld [vmem:[#allocation5 + $0x188] sm:$0xff]  }
 0x134   : > { %v419_v1 = vsel %vm5820_vm9, 0, %v418_v60  ;;  %4572 = vmatpush3.bf16.msra.mxu0 %v5259_v63 }
 0x135   : > { %420 = vst [vmem:[#allocation4] sm:$0x1] %v419_v1  ;;  %4573 = vmatprep.subr.bf16.mxu0 %v5450_v0 }
 0x138   : > { %v583_v2 = vpop.f32.mrb[4].mxu1 }
 0x139   : > { %v4375_v3 = vpop.f32.mrb[5].mxu1  ;;  %v584_v30 = vadd.f32 %v5842_v11, %v583_v2 }
 0x13a   : > { %v586_v4 = vpop.f32.mrb[6].mxu1 }
 0x13b   : > { %v4376_v5 = vpop.f32.mrb[7].mxu1  ;;  %v587_v31 = vadd.f32 %v5842_v11, %v586_v4 }
 0x13c   : > { %v5875_v5 = vpop.permute.xlu1 %999 }
 0x140   : > { %v591_v6 = vpop.f32.mrb[8].mxu1 }
 0x141   : > { %v4379_v7 = vpop.f32.mrb[9].mxu1  ;;  %v592_v53 = vadd.f32 %v5842_v11, %v591_v6 }
 0x142   : > { %v594_v8 = vpop.f32.mrb[10].mxu1 }
 0x143   : > { %v4380_v10 = vpop.f32.mrb[11].mxu1  ;;  %v595_v62 = vadd.f32 %v5842_v11, %v594_v8 }
 0x148   : > { %v5844_v12 = vpop.f32.mrb[12].mxu1 }
 0x149   : > { %v4383_v13 = vpop.f32.mrb[13].mxu1 }
 0x14a   : > { %v5847_v15 = vpop.f32.mrb[14].mxu1 }
 0x14b   : > { %v4384_v16 = vpop.f32.mrb[15].mxu1 }
 0x150   : > { %v5852_v26 = vpop.f32.mrb[16].mxu1 }
 0x151   : > { %v4387_v27 = vpop.f32.mrb[17].mxu1  ;;  %v608_v1 = vadd.f32 %v5842_v11, %v5852_v26 }
 0x152   : > { %v926_v18 = vpop.f32.mrb[0].mxu0  ;;  %v610_v32 = vpop.f32.mrb[18].mxu1 }
 0x153   : > { %v4910_v20 = vadd.f32 %v926_v18, %v576_v14  ;;  %v4443_v21 = vpop.f32.mrb[1].mxu0  ;;  %v4388_v34 = vpop.f32.mrb[19].mxu1 }
 0x154   : > { %v929_v22 = vpop.f32.mrb[2].mxu0 }
 0x155   : > { %v973_v23 = vmax.f32 %v4910_v20, 0.0  ;;  %v4912_v24 = vadd.f32 %v929_v22, %v579_v19  ;;  %v4444_v25 = vpop.f32.mrb[3].mxu0  ;;  %v5260_v19 = vld [vmem:[#allocation5 + $0x190] sm:$0xff]  }
 0x156   : > { %v5882_v25 = vpop.permute.xlu0 %1004  ;;  %4574 = vmatpush3.bf16.msra.mxu0 %v5260_v19 }
 0x157   : > { %v1027_v28 = vmul.f32 %v5849_v17, %v973_v23  ;;  %v974_v29 = vmax.f32 %v4912_v24, 0.0  ;;  %4575 = vmatprep.subr.bf16.mxu0 %v5450_v0 }
 0x159   : > { %v4120_v35 = vpack.c.bf16 %v1027_v28, %v1027_v28  ;;  %v1028_v36 = vmul.f32 %v5856_v33, %v974_v29  ;;  %v600_v28 = vadd.f32 %v5842_v11, %v5844_v12 }
 0x15a   : > { %v934_v37 = vpop.f32.mrb[4].mxu0 }
 0x15b   : > { %v1065_v40 = vshrl.u32 %v4120_v35, 16  ;;  %v4121_v41 = vpack.c.bf16 %v1028_v36, %v1028_v36  ;;  %v4914_v42 = vadd.f32 %v934_v37, %v584_v30  ;;  %v4447_v43 = vpop.f32.mrb[5].mxu0  ;;  %v1068_v46 = vshll.u32 %v4120_v35, 16  ;;  %v5887_v35 = vpop.permute.xlu1 %1009 }
 0x15c   : > { %v937_v44 = vpop.f32.mrb[6].mxu0  ;;  %v603_v43 = vadd.f32 %v5842_v11, %v5847_v15 }
 0x15d   : > { %v1067_v45 = vrot.slane %v1065_v40, 7  ;;  %v1073_v47 = vshrl.u32 %v4121_v41, 16  ;;  %v975_v48 = vmax.f32 %v4914_v42, 0.0  ;;  %v4448_v39 = vpop.f32.mrb[7].mxu0  ;;  %v4916_v52 = vadd.f32 %v937_v44, %v587_v31 }
 0x15e   : > { %v1076_v57 = vshll.u32 %v4121_v41, 16 }
 0x15f   : > { %v1070_v55 = vor.u32 %v1068_v46, %v1067_v45  ;;  %v1075_v56 = vrot.slane %v1073_v47, 7  ;;  %v1029_v59 = vmul.f32 %v5860_v38, %v975_v48  ;;  %v976_v61 = vmax.f32 %v4916_v52, 0.0 }
 0x160   : > { %v1071_v2 = vrot.slane %v1067_v45, 4  ;;  %v5236_v45 = vld [vmem:[#allocation5 + $0x100] sm:$0xff]  }
 0x161   : > { %v1155_v3 = vsel %vm5864_vm2, %v1070_v55, %v1154_v50  ;;  %v1078_v4 = vor.u32 %v1076_v57, %v1075_v56  ;;  %v4122_v6 = vpack.c.bf16 %v1029_v59, %v1029_v59  ;;  %v1030_v7 = vmul.f32 %v5875_v5, %v976_v61  ;;  %v5902_v61 = vpop.permute.xlu0 %1014 }
 0x162   : > { %1156 = vst [vmem:[#allocation3] sm:$0xf] %v1155_v3  ;;  %v942_v8 = vpop.f32.mrb[8].mxu0  ;;  %v1080_v29 = vrot.slane %v1075_v56, 4 }
 0x163   : > { %v1079_v10 = vsel %vm5588_vm11, %v1071_v2, %v1078_v4  ;;  %v1082_v51 = vshrl.u32 %v4122_v6, 16  ;;  %v4918_v13 = vadd.f32 %v942_v8, %v592_v53  ;;  %v4451_v14 = vpop.f32.mrb[9].mxu0  ;;  %v4123_v16 = vpack.c.bf16 %v1030_v7, %v1030_v7  ;;  %v5237_v7 = vld [vmem:[#allocation5 + $0x108] sm:$0xff]  }
 0x164   : > { %1157 = vst [vmem:[#allocation3 + $0x4] sm:$0xf] %v1079_v10  ;;  %v945_v18 = vpop.f32.mrb[10].mxu0  ;;  %v1085_v21 = vshll.u32 %v4122_v6, 16  ;;  %v5911_v10 = vpop.permute.xlu1 %1019 }
 0x165   : > { %v1084_v20 = vrot.slane %v1082_v51, 7  ;;  %v977_v22 = vmax.f32 %v4918_v13, 0.0  ;;  %v4920_v23 = vadd.f32 %v945_v18, %v595_v62  ;;  %v4452_v24 = vpop.f32.mrb[11].mxu0  ;;  %v1091_v27 = vshrl.u32 %v4123_v16, 16 }
 0x166   : > { %v1094_v31 = vshll.u32 %v4123_v16, 16 }
 0x167   : > { %v1087_v30 = vor.u32 %v1085_v21, %v1084_v20  ;;  %v1031_v32 = vmul.f32 %v5882_v25, %v977_v22  ;;  %v978_v34 = vmax.f32 %v4920_v23, 0.0  ;;  %v1093_v36 = vrot.slane %v1091_v27, 7  ;;  %v5239_v22 = vld [vmem:[#allocation5 + $0x110] sm:$0xff]  }
 0x168   : > { %v1089_v42 = vrot.slane %v1084_v20, 4 }
 0x169   : > { %v1088_v37 = vsel %vm5588_vm11, %v1080_v29, %v1087_v30  ;;  %v4124_v40 = vpack.c.bf16 %v1031_v32, %v1031_v32  ;;  %v1032_v41 = vmul.f32 %v5887_v35, %v978_v34  ;;  %v1096_v12 = vor.u32 %v1094_v31, %v1093_v36  ;;  %v1168_v50 = vld [vmem:[#allocation3] sm:$0xf]  ;;  %v5921_v34 = vpop.permute.xlu0 %1024 }
 0x16a   : > { %1158 = vst [vmem:[#allocation3 + $0x8] sm:$0xf] %v1088_v37  ;;  %v950_v44 = vpop.f32.mrb[12].mxu0  ;;  %v1098_v62 = vrot.slane %v1093_v36, 4 }
 0x16b   : > { %v1100_v46 = vshrl.u32 %v4124_v40, 16  ;;  %v4125_v47 = vpack.c.bf16 %v1032_v41, %v1032_v41  ;;  %v4922_v48 = vadd.f32 %v950_v44, %v600_v28  ;;  %v4455_v39 = vpop.f32.mrb[13].mxu0  ;;  %v5895_v52 = vld [vmem:[#allocation3 + $0x4] sm:$0xf]  ;;  %v1097_v53 = vsel %vm5588_vm11, %v1089_v42, %v1096_v12 }
 0x16c   : > { %v953_v54 = vpop.f32.mrb[14].mxu0  ;;  %v5900_v55 = vcombine.low %v1168_v50, %v5895_v52  ;;  %1159 = vst [vmem:[#allocation3 + $0xc] sm:$0xf] %v1097_v53  ;;  %v1103_v57 = vshll.u32 %v4124_v40, 16  ;;  %v5241_v41 = vld [vmem:[#allocation5 + $0x118] sm:$0xff]   ;;  %v5242_v39 = vld [vmem:[#allocation5 + $0x120] sm:$0xff]  }
 0x16d   : > { %v1102_v56 = vrot.slane %v1100_v46, 7  ;;  %v1109_v15 = vshrl.u32 %v4125_v47, 16  ;;  %v979_v59 = vmax.f32 %v4922_v48, 0.0  ;;  %v4456_v60 = vpop.f32.mrb[15].mxu0  ;;  %v4924_v63 = vadd.f32 %v953_v54, %v603_v43 }
 0x16e   : > { %4478 = vmatmul.mubr.bf16.vlgmr.msra.gmra.mrb[20].mxu1 %v5900_v55  ;;  %v1112_v4 = vshll.u32 %v4125_v47, 16  ;;  %v5244_v60 = vld [vmem:[#allocation5 + $0x128] sm:$0xff]  }
 0x16f   : > { %v1105_v2 = vor.u32 %v1103_v57, %v1102_v56  ;;  %v1111_v3 = vrot.slane %v1109_v15, 7  ;;  %v1033_v6 = vmul.f32 %v5902_v61, %v979_v59  ;;  %4498 = vmatpush3.bf16.msra.mxu1 %v5236_v45  ;;  %4481 = vmatprep.mubr.msk.bf16.mxu1 %vm6564_vm7, %v5450_v0  ;;  %v980_v8 = vmax.f32 %v4924_v63, 0.0  ;;  %v1165_v59 = vld [vmem:[#allocation3 + $0x20] sm:$0xf] }
 0x170   : > { %4499 = vmatprep.subr.bf16.mxu1 %v5450_v0  ;;  %v1107_v13 = vrot.slane %v1102_v56, 4 }
 0x171   : > { %v1106_v51 = vsel %vm5588_vm11, %v1098_v62, %v1105_v2  ;;  %v1114_v11 = vor.u32 %v1112_v4, %v1111_v3  ;;  %v4126_v26 = vpack.c.bf16 %v1033_v6, %v1033_v6  ;;  %v1034_v14 = vmul.f32 %v5911_v10, %v980_v8 }
 0x172   : > { %1160 = vst [vmem:[#allocation3 + $0x10] sm:$0xf] %v1106_v51  ;;  %v958_v16 = vpop.f32.mrb[16].mxu0  ;;  %v1116_v31 = vrot.slane %v1111_v3, 4  ;;  %v5247_v3 = vld [vmem:[#allocation5 + $0x138] sm:$0xff]   ;;  %v1374_v4 = vshll.u32 %v5900_v55, 16 }
 0x173   : > { %v1115_v18 = vsel %vm5588_vm11, %v1107_v13, %v1114_v11  ;;  %v1118_v19 = vshrl.u32 %v4126_v26, 16  ;;  %v4926_v20 = vadd.f32 %v958_v16, %v608_v1  ;;  %v4459_v21 = vpop.f32.mrb[17].mxu0  ;;  %4500 = vmatpush3.bf16.msra.mxu1 %v5237_v7  ;;  %v4127_v23 = vpack.c.bf16 %v1034_v14, %v1034_v14  ;;  %v5918_v27 = vld [vmem:[#allocation3 + $0x8] sm:$0xff]   ;;  %v5245_v1 = vld [vmem:[#allocation5 + $0x130] sm:$0xff]  }
 0x174   : > { %1161 = vst [vmem:[#allocation3 + $0x14] sm:$0xf] %v1115_v18  ;;  %v961_v24 = vpop.f32.mrb[18].mxu0  ;;  %4501 = vmatprep.subr.bf16.mxu1 %v5450_v0  ;;  %v1121_v29 = vshll.u32 %v4126_v26, 16  ;;  %v1379_v7 = vshll.u32 %v5918_v27, 16  ;;  %v1376_v8 = vrot.slane %v1374_v4, 1 }
 0x175   : > { %v1120_v28 = vrot.slane %v1118_v19, 7  ;;  %v981_v30 = vmax.f32 %v4926_v20, 0.0  ;;  %v4460_v32 = vpop.f32.mrb[19].mxu0  ;;  %v1127_v36 = vshrl.u32 %v4127_v23, 16  ;;  %v1130_v12 = vshll.u32 %v4127_v23, 16  ;;  %v5248_v26 = vld [vmem:[#allocation5 + $0x140] sm:$0xff]  }
 0x176   : > { %4482 = vmatmul.mubr.bf16.gmra.mrb[24].mxu1 %v5918_v27  ;;  %v1372_v51 = vshrl.u32 %v5900_v55, 16  ;;  %v1381_v13 = vrot.slane %v1379_v7, 1  ;;  %v5249_v18 = vld [vmem:[#allocation5 + $0x148] sm:$0xff]   ;;  %v1383_v19 = vshrl.u32 %v5918_v27, 16  ;;  %v5250_v21 = vld [vmem:[#allocation5 + $0x150] sm:$0xff]   ;;  %v5251_v24 = vld [vmem:[#allocation5 + $0x158] sm:$0xff]  }
 0x177   : > { %v1123_v37 = vor.u32 %v1121_v29, %v1120_v28  ;;  %v1035_v40 = vmul.f32 %v5921_v34, %v981_v30  ;;  %4502 = vmatpush3.bf16.msra.mxu1 %v5239_v22  ;;  %4485 = vmatprep.mubr.msk.bf16.mxu1 %vm6564_vm7, %v5450_v0  ;;  %v1129_v42 = vrot.slane %v1127_v36, 7  ;;  %v1125_v45 = vrot.slane %v1120_v28, 4  ;;  %v5252_v36 = vld [vmem:[#allocation5 + $0x160] sm:$0xff]   ;;  %v421_v4 = vld [vmem:[#allocation4 + $0x20] sm:$0x8] }
 0x178   : > { %4503 = vmatprep.subr.bf16.mxu1 %v5450_v0  ;;  %v1377_v11 = vor.u32 %v1376_v8, %v1372_v51  ;;  %v1385_v55 = vor.u32 %v1383_v19, %v1381_v13  ;;  %v6017_v7 = vld [vmem:[%s6524_s2 + $0x1] ss:$0 sm:$0xff] }
 0x179   : > { %v1124_v43 = vsel %vm5588_vm11, %v1116_v31, %v1123_v37  ;;  %v4128_v44 = vpack.c.bf16 %v1035_v40, %v1035_v40  ;;  %v1132_v46 = vor.u32 %v1130_v12, %v1129_v42  ;;  %v1134_v57 = vrot.slane %v1129_v42, 4  ;;  %v5254_v40 = vld [vmem:[#allocation5 + $0x168] sm:$0xff]  }
 0x17a   : > { %1162 = vst [vmem:[#allocation3 + $0x18] sm:$0xf] %v1124_v43  ;;  %v1382_v14 = vsel %vm634_vm14, %v1377_v11, %v1381_v13  ;;  %v5255_v43 = vld [vmem:[#allocation5 + $0x170] sm:$0xff]  }
 0x17b   : > { %v1136_v47 = vshrl.u32 %v4128_v44, 16  ;;  %v5930_v48 = vld [vmem:[#allocation3 + $0x10] sm:$0xff]   ;;  %4504 = vmatpush3.bf16.msra.mxu1 %v5241_v41  ;;  %v1133_v50 = vsel %vm5588_vm11, %v1125_v45, %v1132_v46  ;;  %v1139_v54 = vshll.u32 %v4128_v44, 16  ;;  %v5256_v45 = vld [vmem:[#allocation5 + $0x178] sm:$0xff]  }
 0x17c   : > { %4505 = vmatprep.subr.bf16.mxu1 %v5450_v0  ;;  %1163 = vst [vmem:[#allocation3 + $0x1c] sm:$0xf] %v1133_v50  ;;  %v1387_v16 = vshll.u32 %v5930_v48, 16  ;;  %v1391_v28 = vshrl.u32 %v5930_v48, 16 }
 0x17d   : > { %v1138_v53 = vrot.slane %v1136_v47, 7 }
 0x17e   : > { %4486 = vmatmul.mubr.bf16.gmra.mrb[28].mxu1 %v5930_v48  ;;  %v1389_v20 = vrot.slane %v1387_v16, 1 }
 0x17f   : > { %v1141_v15 = vor.u32 %v1139_v54, %v1138_v53  ;;  %4506 = vmatpush3.bf16.msra.mxu1 %v5242_v39  ;;  %4489 = vmatprep.mubr.msk.bf16.mxu1 %vm6564_vm7, %v5450_v0  ;;  %v1544_v39 = vld [vmem:[#allocation3] sm:$0xe]  ;;  %v1566_v53 = vrot.slane %v5918_v27, 1 }
 0x180   : > { %4507 = vmatprep.subr.bf16.mxu1 %v5450_v0  ;;  %v1390_v22 = vsel %vm634_vm14, %v1385_v55, %v1389_v20  ;;  %v1393_v32 = vor.u32 %v1391_v28, %v1389_v20  ;;  %v3961_v50 = vcombine.low %v1544_v39, %v5895_v52 }
 0x181   : > { %v1142_v62 = vsel %vm5588_vm11, %v1134_v57, %v1141_v15  ;;  %v1568_v15 = vrot.slane %v5930_v48, 1  ;;  %v5261_v48 = vld [vmem:[#allocation5 + $0x198] sm:$0xff]  }
 0x182   : > { %v1166_v63 = vsel %vm5938_vm13, %v1142_v62, %v1165_v59  ;;  %v1565_v54 = vrot.slane %v3961_v50, 1  ;;  %4576 = vmatpush3.bf16.msra.mxu0 %v5261_v48  ;;  %v5291_v48 = vld [vmem:[#allocation5 + $0x250] sm:$0xff]  }
 0x183   : > { %1167 = vst [vmem:[#allocation3 + $0x20] sm:$0xf] %v1166_v63  ;;  %4508 = vmatpush3.bf16.msra.mxu1 %v5244_v60  ;;  %v5949_v2 = vld [vmem:[#allocation3 + $0x18] sm:$0xff]   ;;  %v1569_v59 = vsel %vm829_vm3, %v1566_v53, %v1568_v15  ;;  %4577 = vmatprep.subr.bf16.mxu0 %v5450_v0  ;;  %v5262_v63 = vld [vmem:[#allocation5 + $0x1a0] sm:$0xff]  }
 0x184   : > { %4509 = vmatprep.subr.bf16.mxu1 %v5450_v0  ;;  %v1395_v23 = vshll.u32 %v5949_v2, 16  ;;  %v1399_v41 = vshrl.u32 %v5949_v2, 16  ;;  %v1567_v57 = vsel %vm829_vm3, %v1565_v54, %v1566_v53  ;;  %v1570_v60 = vrot.slane %v5949_v2, 1 }
 0x186   : > { %4490 = vmatmul.mubr.bf16.gmra.mrb[32].mxu1 %v5949_v2  ;;  %v1397_v29 = vrot.slane %v1395_v23, 1  ;;  %v1571_v52 = vsel %vm829_vm3, %v1568_v15, %v1570_v60  ;;  %4578 = vmatpush3.bf16.msra.mxu0 %v5262_v63  ;;  %v5264_v2 = vld [vmem:[#allocation5 + $0x1b0] sm:$0xff]  }
 0x187   : > { %4493 = vmatprep.mubr.msk.bf16.mxu1 %vm6564_vm7, %v5450_v0  ;;  %4510 = vmatpush3.bf16.msra.mxu1 %v5245_v1  ;;  %v5263_v1 = vld [vmem:[#allocation5 + $0x1a8] sm:$0xff]  }
 0x188   : > { %4511 = vmatprep.subr.bf16.mxu1 %v5450_v0  ;;  %v1398_v31 = vsel %vm634_vm14, %v1393_v32, %v1397_v29  ;;  %v1401_v12 = vor.u32 %v1399_v41, %v1397_v29  ;;  %4579 = vmatprep.subr.bf16.mxu0 %v5450_v0  ;;  %v5289_v41 = vld [vmem:[#allocation5 + $0x240] sm:$0xff]  }
 0x18a   : > { %v5246_v6 = vld [vmem:[#allocation3 + $0x20] ss:$0 sps:$4 sm:$0x77]   ;;  %4580 = vmatpush3.bf16.msra.mxu0 %v5263_v1 }
 0x18b   : > { %4512 = vmatpush3.bf16.msra.mxu1 %v5247_v3  ;;  %v5253_v30 = vld [vmem:[#allocation3 + $0x20] ss:$0 sps:$4 sm:$0xff]   ;;  %4581 = vmatprep.subr.bf16.mxu0 %v5450_v0 }
 0x18c   : > { %4533 = vmatprep.subr.bf16.mxu1 %v5450_v0  ;;  %v1403_v37 = vshll.u32 %v5253_v30, 16  ;;  %v1407_v46 = vshrl.u32 %v5253_v30, 16  ;;  %v1572_v27 = vrot.slane %v5253_v30, 1  ;;  %v5265_v3 = vld [vmem:[#allocation5 + $0x1b8] sm:$0xff]  }
 0x18e   : > { %4494 = vmatmul.mubr.bf16.gmra.mrb[36].mxu1 %v5246_v6  ;;  %v1405_v42 = vrot.slane %v1403_v37, 1  ;;  %v1573_v62 = vsel %vm829_vm3, %v1570_v60, %v1572_v27  ;;  %4582 = vmatpush3.bf16.msra.mxu0 %v5264_v2  ;;  %v422_v6 = vsel %vm5833_vm0, 0, %v421_v4  ;;  %v1842_v37 = vld [vmem:[#allocation4] sm:$0xf] }
 0x18f   : > { %4513 = vmatprep.mubr.msk.bf16.mxu1 %vm6564_vm7, %v5450_v0  ;;  %4583 = vmatprep.subr.bf16.mxu0 %v5450_v0  ;;  %423 = vst [vmem:[#allocation4 + $0x20] sm:$0x8] %v422_v6 }
 0x190   : > { %v1406_v44 = vsel %vm634_vm14, %v1401_v12, %v1405_v42  ;;  %v1409_v47 = vor.u32 %v1407_v46, %v1405_v42  ;;  %v5290_v46 = vld [vmem:[#allocation5 + $0x248] sm:$0xff]  }
 0x192   : > { %4584 = vmatpush3.bf16.msra.mxu0 %v5265_v3 }
 0x193   : > { %4605 = vmatprep.subr.bf16.mxu0 %v5450_v0 }
 0x196   : > { %4514 = vmatmul.mubr.bf16.vlgmr.msra.gmra.mrb[20].mxu1 %v1382_v14 }
 0x197   : > { %4534 = vmatpush3.bf16.msra.mxu1 %v5248_v26  ;;  %4517 = vmatprep.mubr.msk.bf16.mxu1 %vm6564_vm7, %v5450_v0 }
 0x198   : > { %4535 = vmatprep.subr.bf16.mxu1 %v5450_v0 }
 0x19b   : > { %4536 = vmatpush3.bf16.msra.mxu1 %v5249_v18 }
 0x19c   : > { %4537 = vmatprep.subr.bf16.mxu1 %v5450_v0 }
 0x19e   : > { %4518 = vmatmul.mubr.bf16.gmra.mrb[24].mxu1 %v1390_v22 }
 0x19f   : > { %4538 = vmatpush3.bf16.msra.mxu1 %v5250_v21  ;;  %4521 = vmatprep.mubr.msk.bf16.mxu1 %vm6564_vm7, %v5450_v0 }
 0x1a0   : > { %4539 = vmatprep.subr.bf16.mxu1 %v5450_v0 }
 0x1a3   : > { %4540 = vmatpush3.bf16.msra.mxu1 %v5251_v24 }
 0x1a4   : > { %4541 = vmatprep.subr.bf16.mxu1 %v5450_v0 }
 0x1a6   : > { %4522 = vmatmul.mubr.bf16.gmra.mrb[28].mxu1 %v1398_v31 }
 0x1a7   : > { %4542 = vmatpush3.bf16.msra.mxu1 %v5252_v36  ;;  %4525 = vmatprep.mubr.msk.bf16.mxu1 %vm6564_vm7, %v5450_v0 }
 0x1a8   : > { %4543 = vmatprep.subr.bf16.mxu1 %v5450_v0 }
 0x1ab   : > { %4544 = vmatpush3.bf16.msra.mxu1 %v5254_v40 }
 0x1ac   : > { %4545 = vmatprep.subr.bf16.mxu1 %v5450_v0 }
 0x1ae   : > { %4526 = vmatmul.mubr.bf16.gmra.mrb[32].mxu1 %v1406_v44 }
 0x1af   : > { %4529 = vmatprep.mubr.msk.bf16.mxu1 %vm6564_vm7, %v5450_v0  ;;  %4546 = vmatpush3.bf16.msra.mxu1 %v5255_v43 }
 0x1b0   : > { %4547 = vmatprep.subr.bf16.mxu1 %v5450_v0 }
 0x1b3   : > { %4548 = vmatpush3.bf16.msra.mxu1 %v5256_v45 }
 0x1b4   : > { %4677 = vmatprep.subr.bf16.mxu1 %v5450_v0 }
 0x1b6   : > { %4530 = vmatmul.mubr.bf16.gmra.mrb[36].mxu1 %v1409_v47 }
 0x1b7   : > { %4549 = vmatprep.mubr.msk.bf16.mxu1 %vm6564_vm7, %v5450_v0 }
 0x1be   : > { %4550 = vmatmul.mubr.bf16.vlgmr.msra.gmra.mrb[20].mxu1 %v1567_v57 }
 0x1bf   : > { %4553 = vmatprep.mubr.msk.bf16.mxu1 %vm6564_vm7, %v5450_v0  ;;  %4678 = vmatpush3.bf16.msra.mxu1 %v5289_v41 }
 0x1c0   : > { %4679 = vmatprep.subr.bf16.mxu1 %v5450_v0 }
 0x1c3   : > { %4680 = vmatpush3.bf16.msra.mxu1 %v5290_v46 }
 0x1c4   : > { %4681 = vmatprep.subr.bf16.mxu1 %v5450_v0 }
 0x1c6   : > { %4554 = vmatmul.mubr.bf16.gmra.mrb[24].mxu1 %v1569_v59 }
 0x1c7   : > { %4557 = vmatprep.mubr.msk.bf16.mxu1 %vm6564_vm7, %v5450_v0  ;;  %4682 = vmatpush3.bf16.msra.mxu1 %v5291_v48 }
 0x1c8   : > { %4683 = vmatprep.subr.bf16.mxu1 %v5450_v0 }
 0x1ce   : > { %4558 = vmatmul.mubr.bf16.gmra.mrb[28].mxu1 %v1571_v52 }
 0x1cf   : > { %4561 = vmatprep.mubr.msk.bf16.mxu1 %vm6564_vm7, %v5450_v0 }
 0x1d6   : > { %4562 = vmatmul.mubr.bf16.gmra.mrb[32].mxu1 %v1573_v62 }
 0x1d7   : > { %4565 = vmatprep.mubr.msk.bf16.mxu1 %vm6564_vm7, %v5450_v0 }
 0x1de   : > { %4566 = vmatmul.mubr.bf16.gmra.mrb[36].mxu1 %v1572_v27 }
 0x1df   : > { %4693 = vmatprep.mubr.msk.bf16.mxu1 %vm6564_vm7, %v5450_v0 }
 0x291   : > { %v1661_v8 = vpop.f32.mrb[20].mxu1 }
 0x292   : > { %v4927_v51 = vadd.f32 %v6017_v7, %v1661_v8  ;;  %v4551_v13 = vpop.f32.mrb[21].mxu1 }
 0x293   : > { %v1664_v11 = vpop.f32.mrb[22].mxu1 }
 0x294   : > { %v1708_v26 = vmax.f32 %v4927_v51, 0.0  ;;  %v4928_v14 = vadd.f32 %v6017_v7, %v1664_v11  ;;  %v4552_v16 = vpop.f32.mrb[23].mxu1 }
 0x296   : > { %v1717_v18 = vmul.f32 %v1708_v26, %v5849_v17  ;;  %v1709_v19 = vmax.f32 %v4928_v14, 0.0 }
 0x298   : > { %v4129_v58 = vpack.c.bf16 %v1717_v18, %v1717_v18  ;;  %v1718_v20 = vmul.f32 %v1709_v19, %v5856_v33 }
 0x299   : > { %v1669_v55 = vpop.f32.mrb[24].mxu1 }
 0x29a   : > { %v1755_v21 = vshrl.u32 %v4129_v58, 16  ;;  %v4130_v22 = vpack.c.bf16 %v1718_v20, %v1718_v20  ;;  %v4929_v23 = vadd.f32 %v6017_v7, %v1669_v55  ;;  %v4555_v24 = vpop.f32.mrb[25].mxu1  ;;  %v1758_v30 = vshll.u32 %v4129_v58, 16 }
 0x29b   : > { %v1672_v28 = vpop.f32.mrb[26].mxu1 }
 0x29c   : > { %v1757_v29 = vrot.slane %v1755_v21, 7  ;;  %v1763_v32 = vshrl.u32 %v4130_v22, 16  ;;  %v1710_v36 = vmax.f32 %v4929_v23, 0.0  ;;  %v4556_v31 = vpop.f32.mrb[27].mxu1  ;;  %v4930_v40 = vadd.f32 %v6017_v7, %v1672_v28  ;;  %v5267_v21 = vld [vmem:[#allocation5 + $0x1c0] sm:$0xff]  }
 0x29d   : > { %v1766_v43 = vshll.u32 %v4130_v22, 16 }
 0x29e   : > { %v1760_v42 = vor.u32 %v1758_v30, %v1757_v29  ;;  %v1765_v12 = vrot.slane %v1763_v32, 7  ;;  %v1719_v44 = vmul.f32 %v1710_v36, %v5860_v38  ;;  %v1711_v45 = vmax.f32 %v4930_v40, 0.0 }
 0x29f   : > { %v1761_v47 = vrot.slane %v1757_v29, 4 }
 0x2a0   : > { %v1843_v39 = vsel %vm5864_vm2, %v1760_v42, %v1842_v37  ;;  %v1768_v50 = vor.u32 %v1766_v43, %v1765_v12  ;;  %v4131_v53 = vpack.c.bf16 %v1719_v44, %v1719_v44  ;;  %v1720_v54 = vmul.f32 %v1711_v45, %v5875_v5 }
 0x2a1   : > { %1844 = vst [vmem:[#allocation4] sm:$0xf] %v1843_v39  ;;  %v1677_v57 = vpop.f32.mrb[28].mxu1  ;;  %v1770_v8 = vrot.slane %v1765_v12, 4 }
 0x2a2   : > { %v1769_v15 = vsel %vm5588_vm11, %v1761_v47, %v1768_v50  ;;  %v1772_v59 = vshrl.u32 %v4131_v53, 16  ;;  %v4931_v60 = vadd.f32 %v6017_v7, %v1677_v57  ;;  %v4559_v52 = vpop.f32.mrb[29].mxu1  ;;  %v4132_v27 = vpack.c.bf16 %v1720_v54, %v1720_v54  ;;  %v5268_v50 = vld [vmem:[#allocation5 + $0x1c8] sm:$0xff]  }
 0x2a3   : > { %1845 = vst [vmem:[#allocation4 + $0x4] sm:$0xf] %v1769_v15  ;;  %v1680_v62 = vpop.f32.mrb[30].mxu1  ;;  %v1775_v1 = vshll.u32 %v4131_v53, 16 }
 0x2a4   : > { %v1774_v63 = vrot.slane %v1772_v59, 7  ;;  %v1712_v2 = vmax.f32 %v4931_v60, 0.0  ;;  %v4932_v3 = vadd.f32 %v6017_v7, %v1680_v62  ;;  %v4560_v4 = vpop.f32.mrb[31].mxu1  ;;  %v1781_v6 = vshrl.u32 %v4132_v27, 16 }
 0x2a5   : > { %v1784_v14 = vshll.u32 %v4132_v27, 16 }
 0x2a6   : > { %v1777_v51 = vor.u32 %v1775_v1, %v1774_v63  ;;  %v1721_v13 = vmul.f32 %v1712_v2, %v5882_v25  ;;  %v1713_v11 = vmax.f32 %v4932_v3, 0.0  ;;  %v1783_v26 = vrot.slane %v1781_v6, 7  ;;  %v5270_v1 = vld [vmem:[#allocation5 + $0x1d0] sm:$0xff]  }
 0x2a7   : > { %v1779_v58 = vrot.slane %v1774_v63, 4 }
 0x2a8   : > { %v1778_v16 = vsel %vm5588_vm11, %v1770_v8, %v1777_v51  ;;  %v4133_v18 = vpack.c.bf16 %v1721_v13, %v1721_v13  ;;  %v1722_v19 = vmul.f32 %v1713_v11, %v5887_v35  ;;  %v1786_v20 = vor.u32 %v1784_v14, %v1783_v26  ;;  %v1855_v29 = vld [vmem:[#allocation4] sm:$0xf] }
 0x2a9   : > { %1846 = vst [vmem:[#allocation4 + $0x8] sm:$0xf] %v1778_v16  ;;  %v1685_v55 = vpop.f32.mrb[32].mxu1  ;;  %v1788_v43 = vrot.slane %v1783_v26, 4  ;;  %v5272_v16 = vld [vmem:[#allocation5 + $0x1d8] sm:$0xff]  }
 0x2aa   : > { %v1790_v22 = vshrl.u32 %v4133_v18, 16  ;;  %v4134_v23 = vpack.c.bf16 %v1722_v19, %v1722_v19  ;;  %v4933_v24 = vadd.f32 %v6017_v7, %v1685_v55  ;;  %v4563_v28 = vpop.f32.mrb[33].mxu1  ;;  %v6041_v30 = vld [vmem:[#allocation4 + $0x4] sm:$0xf]  ;;  %v1787_v32 = vsel %vm5588_vm11, %v1779_v58, %v1786_v20 }
 0x2ab   : > { %v1688_v36 = vpop.f32.mrb[34].mxu1  ;;  %v6046_v31 = vcombine.low %v1855_v29, %v6041_v30  ;;  %1847 = vst [vmem:[#allocation4 + $0xc] sm:$0xf] %v1787_v32  ;;  %v1793_v40 = vshll.u32 %v4133_v18, 16 }
 0x2ac   : > { %v1792_v37 = vrot.slane %v1790_v22, 7  ;;  %v1799_v41 = vshrl.u32 %v4134_v23, 16  ;;  %v1714_v42 = vmax.f32 %v4933_v24, 0.0  ;;  %v4564_v12 = vpop.f32.mrb[35].mxu1  ;;  %v4934_v44 = vadd.f32 %v6017_v7, %v1688_v36  ;;  %v5273_v24 = vld [vmem:[#allocation5 + $0x1e0] sm:$0xff]  }
 0x2ad   : > { %4586 = vmatmul.mubr.bf16.vlgmr.msra.gmra.mrb[20].mxu0 %v6046_v31  ;;  %v1802_v47 = vshll.u32 %v4134_v23, 16 }
 0x2ae   : > { %v1795_v45 = vor.u32 %v1793_v40, %v1792_v37  ;;  %v1801_v46 = vrot.slane %v1799_v41, 7  ;;  %v1723_v39 = vmul.f32 %v1714_v42, %v5902_v61  ;;  %4606 = vmatpush3.bf16.msra.mxu0 %v5267_v21  ;;  %4589 = vmatprep.mubr.msk.bf16.mxu0 %vm6564_vm7, %v5450_v0  ;;  %v1715_v53 = vmax.f32 %v4934_v44, 0.0  ;;  %v1852_v40 = vld [vmem:[#allocation4 + $0x20] sm:$0xf]  ;;  %v5275_v41 = vld [vmem:[#allocation5 + $0x1e8] sm:$0xff]  }
 0x2af   : > { %4607 = vmatprep.subr.bf16.mxu0 %v5450_v0  ;;  %v1797_v57 = vrot.slane %v1792_v37, 4 }
 0x2b0   : > { %v1796_v54 = vsel %vm5588_vm11, %v1788_v43, %v1795_v45  ;;  %v1804_v15 = vor.u32 %v1802_v47, %v1801_v46  ;;  %v4135_v59 = vpack.c.bf16 %v1723_v39, %v1723_v39  ;;  %v1724_v60 = vmul.f32 %v1715_v53, %v5911_v10  ;;  %v5276_v43 = vld [vmem:[#allocation5 + $0x1f0] sm:$0xff]   ;;  %v5278_v45 = vld [vmem:[#allocation5 + $0x1f8] sm:$0xff]  }
 0x2b1   : > { %1848 = vst [vmem:[#allocation4 + $0x10] sm:$0xf] %v1796_v54  ;;  %v1693_v52 = vpop.f32.mrb[36].mxu1  ;;  %v1806_v26 = vrot.slane %v1801_v46, 4  ;;  %v2061_v46 = vshll.u32 %v6046_v31, 16  ;;  %v2059_v53 = vshrl.u32 %v6046_v31, 16 }
 0x2b2   : > { %v1805_v27 = vsel %vm5588_vm11, %v1797_v57, %v1804_v15  ;;  %v1808_v62 = vshrl.u32 %v4135_v59, 16  ;;  %v4935_v48 = vadd.f32 %v6017_v7, %v1693_v52  ;;  %v4567_v63 = vpop.f32.mrb[37].mxu1  ;;  %4608 = vmatpush3.bf16.msra.mxu0 %v5268_v50  ;;  %v4136_v2 = vpack.c.bf16 %v1724_v60, %v1724_v60  ;;  %v6060_v4 = vld [vmem:[#allocation4 + $0x8] sm:$0xff]  }
 0x2b3   : > { %1849 = vst [vmem:[#allocation4 + $0x14] sm:$0xf] %v1805_v27  ;;  %v1696_v3 = vpop.f32.mrb[38].mxu1  ;;  %4609 = vmatprep.subr.bf16.mxu0 %v5450_v0  ;;  %v1811_v8 = vshll.u32 %v4135_v59, 16  ;;  %v2066_v39 = vshll.u32 %v6060_v4, 16  ;;  %v2063_v50 = vrot.slane %v2061_v46, 1 }
 0x2b4   : > { %v1810_v6 = vrot.slane %v1808_v62, 7  ;;  %v1716_v51 = vmax.f32 %v4935_v48, 0.0  ;;  %v4568_v13 = vpop.f32.mrb[39].mxu1  ;;  %v1817_v11 = vshrl.u32 %v4136_v2, 16  ;;  %v1820_v19 = vshll.u32 %v4136_v2, 16  ;;  %v5279_v15 = vld [vmem:[#allocation5 + $0x200] sm:$0xff]  }
 0x2b5   : > { %4590 = vmatmul.mubr.bf16.gmra.mrb[24].mxu0 %v6060_v4  ;;  %v2068_v54 = vrot.slane %v2066_v39, 1  ;;  %v2064_v57 = vor.u32 %v2063_v50, %v2059_v53  ;;  %v5280_v52 = vld [vmem:[#allocation5 + $0x208] sm:$0xff]   ;;  %v2070_v27 = vshrl.u32 %v6060_v4, 16  ;;  %v5281_v48 = vld [vmem:[#allocation5 + $0x210] sm:$0xff]   ;;  %v5282_v2 = vld [vmem:[#allocation5 + $0x218] sm:$0xff]  }
 0x2b6   : > { %v1813_v14 = vor.u32 %v1811_v8, %v1810_v6  ;;  %v1725_v7 = vmul.f32 %v1716_v51, %v5921_v34  ;;  %4610 = vmatpush3.bf16.msra.mxu0 %v5270_v1  ;;  %4593 = vmatprep.mubr.msk.bf16.mxu0 %vm6564_vm7, %v5450_v0  ;;  %v1819_v18 = vrot.slane %v1817_v11, 7  ;;  %v1815_v55 = vrot.slane %v1810_v6, 4  ;;  %v5283_v13 = vld [vmem:[#allocation5 + $0x220] sm:$0xff]  }
 0x2b7   : > { %4611 = vmatprep.subr.bf16.mxu0 %v5450_v0  ;;  %v2069_v59 = vsel %vm634_vm14, %v2064_v57, %v2068_v54  ;;  %v2072_v31 = vor.u32 %v2070_v27, %v2068_v54 }
 0x2b8   : > { %v1814_v58 = vsel %vm5588_vm11, %v1806_v26, %v1813_v14  ;;  %v4137_v20 = vpack.c.bf16 %v1725_v7, %v1725_v7  ;;  %v1822_v21 = vor.u32 %v1820_v19, %v1819_v18  ;;  %v1824_v36 = vrot.slane %v1819_v18, 4  ;;  %v5285_v14 = vld [vmem:[#allocation5 + $0x228] sm:$0xff]   ;;  %v5286_v19 = vld [vmem:[#allocation5 + $0x230] sm:$0xff]  }
 0x2b9   : > { %1850 = vst [vmem:[#allocation4 + $0x18] sm:$0xf] %v1814_v58 }
 0x2ba   : > { %v1826_v22 = vshrl.u32 %v4137_v20, 16  ;;  %v6070_v23 = vld [vmem:[#allocation4 + $0x10] sm:$0xff]   ;;  %4612 = vmatpush3.bf16.msra.mxu0 %v5272_v16  ;;  %v1823_v28 = vsel %vm5588_vm11, %v1815_v55, %v1822_v21  ;;  %v1829_v32 = vshll.u32 %v4137_v20, 16  ;;  %v5287_v20 = vld [vmem:[#allocation5 + $0x238] sm:$0xff]  }
 0x2bb   : > { %4613 = vmatprep.subr.bf16.mxu0 %v5450_v0  ;;  %1851 = vst [vmem:[#allocation4 + $0x1c] sm:$0xf] %v1823_v28  ;;  %v2074_v60 = vshll.u32 %v6070_v23, 16  ;;  %v2078_v3 = vshrl.u32 %v6070_v23, 16  ;;  %v2253_v28 = vrot.slane %v6060_v4, 1 }
 0x2bc   : > { %v1828_v29 = vrot.slane %v1826_v22, 7  ;;  %v2231_v22 = vld [vmem:[#allocation4] sm:$0xe] }
 0x2bd   : > { %4594 = vmatmul.mubr.bf16.gmra.mrb[28].mxu0 %v6070_v23  ;;  %v2076_v62 = vrot.slane %v2074_v60, 1 }
 0x2be   : > { %v1831_v37 = vor.u32 %v1829_v32, %v1828_v29  ;;  %4614 = vmatpush3.bf16.msra.mxu0 %v5273_v24  ;;  %4597 = vmatprep.mubr.msk.bf16.mxu0 %vm6564_vm7, %v5450_v0  ;;  %v4003_v24 = vcombine.low %v2231_v22, %v6041_v30 }
 0x2bf   : > { %4615 = vmatprep.subr.bf16.mxu0 %v5450_v0  ;;  %v2077_v63 = vsel %vm634_vm14, %v2072_v31, %v2076_v62  ;;  %v2080_v51 = vor.u32 %v2078_v3, %v2076_v62 }
 0x2c0   : > { %v1832_v42 = vsel %vm5588_vm11, %v1824_v36, %v1831_v37  ;;  %v2252_v29 = vrot.slane %v4003_v24, 1  ;;  %v2255_v36 = vrot.slane %v6070_v23, 1  ;;  %v5292_v23 = vld [vmem:[#allocation5 + $0x258] sm:$0xff]  }
 0x2c1   : > { %v1853_v12 = vsel %vm5938_vm13, %v1832_v42, %v1852_v40  ;;  %4684 = vmatpush3.bf16.msra.mxu1 %v5292_v23  ;;  %v5293_v42 = vld [vmem:[#allocation5 + $0x260] sm:$0xff]  }
 0x2c2   : > { %1854 = vst [vmem:[#allocation4 + $0x20] sm:$0xf] %v1853_v12  ;;  %4616 = vmatpush3.bf16.msra.mxu0 %v5275_v41  ;;  %v6083_v44 = vld [vmem:[#allocation4 + $0x18] sm:$0xff]   ;;  %v2254_v32 = vsel %vm829_vm3, %v2252_v29, %v2253_v28  ;;  %v2256_v37 = vsel %vm829_vm3, %v2253_v28, %v2255_v36  ;;  %4685 = vmatprep.subr.bf16.mxu1 %v5450_v0  ;;  %v5294_v12 = vld [vmem:[#allocation5 + $0x268] sm:$0xff]  }
 0x2c3   : > { %4617 = vmatprep.subr.bf16.mxu0 %v5450_v0  ;;  %v2082_v1 = vshll.u32 %v6083_v44, 16  ;;  %v2086_v7 = vshrl.u32 %v6083_v44, 16  ;;  %v2257_v40 = vrot.slane %v6083_v44, 1 }
 0x2c5   : > { %4598 = vmatmul.mubr.bf16.gmra.mrb[32].mxu0 %v6083_v44  ;;  %v2084_v6 = vrot.slane %v2082_v1, 1  ;;  %v2258_v30 = vsel %vm829_vm3, %v2255_v36, %v2257_v40  ;;  %4686 = vmatpush3.bf16.msra.mxu1 %v5293_v42  ;;  %v5296_v44 = vld [vmem:[#allocation5 + $0x278] sm:$0xff]  }
 0x2c6   : > { %4601 = vmatprep.mubr.msk.bf16.mxu0 %vm6564_vm7, %v5450_v0  ;;  %4618 = vmatpush3.bf16.msra.mxu0 %v5276_v43  ;;  %v5295_v43 = vld [vmem:[#allocation5 + $0x270] sm:$0xff]  }
 0x2c7   : > { %4619 = vmatprep.subr.bf16.mxu0 %v5450_v0  ;;  %v2085_v11 = vsel %vm634_vm14, %v2080_v51, %v2084_v6  ;;  %v2088_v18 = vor.u32 %v2086_v7, %v2084_v6  ;;  %4687 = vmatprep.subr.bf16.mxu1 %v5450_v0 }
 0x2c9   : > { %v5277_v47 = vld [vmem:[#allocation4 + $0x20] ss:$0 sps:$4 sm:$0x77]   ;;  %4688 = vmatpush3.bf16.msra.mxu1 %v5294_v12 }
 0x2ca   : > { %4620 = vmatpush3.bf16.msra.mxu0 %v5278_v45  ;;  %v5284_v8 = vld [vmem:[#allocation4 + $0x20] ss:$0 sps:$4 sm:$0xff]   ;;  %4689 = vmatprep.subr.bf16.mxu1 %v5450_v0  ;;  %v6149_v45 = vld [vmem:[%s6524_s2 + $0x2] ss:$0 sm:$0xff] }
 0x2cb   : > { %4641 = vmatprep.subr.bf16.mxu0 %v5450_v0  ;;  %v2090_v26 = vshll.u32 %v5284_v8, 16  ;;  %v2094_v55 = vshrl.u32 %v5284_v8, 16  ;;  %v2259_v4 = vrot.slane %v5284_v8, 1 }
 0x2cd   : > { %4602 = vmatmul.mubr.bf16.gmra.mrb[36].mxu0 %v5277_v47  ;;  %v2092_v16 = vrot.slane %v2090_v26, 1  ;;  %v2260_v41 = vsel %vm829_vm3, %v2257_v40, %v2259_v4  ;;  %4690 = vmatpush3.bf16.msra.mxu1 %v5295_v43 }
 0x2ce   : > { %4621 = vmatprep.mubr.msk.bf16.mxu0 %vm6564_vm7, %v5450_v0  ;;  %4691 = vmatprep.subr.bf16.mxu1 %v5450_v0 }
 0x2cf   : > { %v2093_v58 = vsel %vm634_vm14, %v2088_v18, %v2092_v16  ;;  %v2096_v21 = vor.u32 %v2094_v55, %v2092_v16  ;;  %v2529_v18 = vld [vmem:[#allocation3] sm:$0xf] }
 0x2d1   : > { %4692 = vmatpush3.bf16.msra.mxu1 %v5296_v44 }
 0x2d2   : > { %4713 = vmatprep.subr.bf16.mxu1 %v5450_v0 }
 0x2d5   : > { %4622 = vmatmul.mubr.bf16.vlgmr.msra.gmra.mrb[20].mxu0 %v2069_v59 }
 0x2d6   : > { %4642 = vmatpush3.bf16.msra.mxu0 %v5279_v15  ;;  %4625 = vmatprep.mubr.msk.bf16.mxu0 %vm6564_vm7, %v5450_v0 }
 0x2d7   : > { %4643 = vmatprep.subr.bf16.mxu0 %v5450_v0 }
 0x2da   : > { %4644 = vmatpush3.bf16.msra.mxu0 %v5280_v52 }
 0x2db   : > { %4645 = vmatprep.subr.bf16.mxu0 %v5450_v0 }
 0x2dd   : > { %4626 = vmatmul.mubr.bf16.gmra.mrb[24].mxu0 %v2077_v63 }
 0x2de   : > { %4646 = vmatpush3.bf16.msra.mxu0 %v5281_v48  ;;  %4629 = vmatprep.mubr.msk.bf16.mxu0 %vm6564_vm7, %v5450_v0 }
 0x2df   : > { %4647 = vmatprep.subr.bf16.mxu0 %v5450_v0 }
 0x2e2   : > { %4648 = vmatpush3.bf16.msra.mxu0 %v5282_v2 }
 0x2e3   : > { %4649 = vmatprep.subr.bf16.mxu0 %v5450_v0 }
 0x2e5   : > { %4630 = vmatmul.mubr.bf16.gmra.mrb[28].mxu0 %v2085_v11  ;;  %v5320_v11 = vld [vmem:[#allocation5 + $0x300] sm:$0xff]  }
 0x2e6   : > { %4650 = vmatpush3.bf16.msra.mxu0 %v5283_v13  ;;  %4633 = vmatprep.mubr.msk.bf16.mxu0 %vm6564_vm7, %v5450_v0 }
 0x2e7   : > { %4651 = vmatprep.subr.bf16.mxu0 %v5450_v0 }
 0x2ea   : > { %4652 = vmatpush3.bf16.msra.mxu0 %v5285_v14 }
 0x2eb   : > { %4653 = vmatprep.subr.bf16.mxu0 %v5450_v0 }
 0x2ed   : > { %4634 = vmatmul.mubr.bf16.gmra.mrb[32].mxu0 %v2093_v58  ;;  %v5321_v58 = vld [vmem:[#allocation5 + $0x308] sm:$0xff]  }
 0x2ee   : > { %4637 = vmatprep.mubr.msk.bf16.mxu0 %vm6564_vm7, %v5450_v0  ;;  %4654 = vmatpush3.bf16.msra.mxu0 %v5286_v19 }
 0x2ef   : > { %4655 = vmatprep.subr.bf16.mxu0 %v5450_v0 }
 0x2f2   : > { %4656 = vmatpush3.bf16.msra.mxu0 %v5287_v20 }
 0x2f3   : > { %4785 = vmatprep.subr.bf16.mxu0 %v5450_v0 }
 0x2f5   : > { %4638 = vmatmul.mubr.bf16.gmra.mrb[36].mxu0 %v2096_v21 }
 0x2f6   : > { %4657 = vmatprep.mubr.msk.bf16.mxu0 %vm6564_vm7, %v5450_v0 }
 0x2fd   : > { %4658 = vmatmul.mubr.bf16.vlgmr.msra.gmra.mrb[20].mxu0 %v2254_v32 }
 0x2fe   : > { %4661 = vmatprep.mubr.msk.bf16.mxu0 %vm6564_vm7, %v5450_v0  ;;  %4786 = vmatpush3.bf16.msra.mxu0 %v5320_v11 }
 0x2ff   : > { %4787 = vmatprep.subr.bf16.mxu0 %v5450_v0 }
 0x302   : > { %4788 = vmatpush3.bf16.msra.mxu0 %v5321_v58 }
 0x303   : > { %4789 = vmatprep.subr.bf16.mxu0 %v5450_v0 }
 0x305   : > { %4662 = vmatmul.mubr.bf16.gmra.mrb[24].mxu0 %v2256_v37 }
 0x306   : > { %4665 = vmatprep.mubr.msk.bf16.mxu0 %vm6564_vm7, %v5450_v0 }
 0x30d   : > { %4666 = vmatmul.mubr.bf16.gmra.mrb[28].mxu0 %v2258_v30 }
 0x30e   : > { %4669 = vmatprep.mubr.msk.bf16.mxu0 %vm6564_vm7, %v5450_v0 }
 0x315   : > { %4670 = vmatmul.mubr.bf16.gmra.mrb[32].mxu0 %v2260_v41 }
 0x316   : > { %4673 = vmatprep.mubr.msk.bf16.mxu0 %vm6564_vm7, %v5450_v0 }
 0x31d   : > { %4674 = vmatmul.mubr.bf16.gmra.mrb[36].mxu0 %v2259_v4  ;;  %v5322_v4 = vld [vmem:[#allocation5 + $0x310] sm:$0xff]  }
 0x31e   : > { %4801 = vmatprep.mubr.msk.bf16.mxu0 %vm6564_vm7, %v5450_v0  ;;  %4790 = vmatpush3.bf16.msra.mxu0 %v5322_v4 }
 0x31f   : > { %4791 = vmatprep.subr.bf16.mxu0 %v5450_v0 }
 0x3d0   : > { %v2348_v46 = vpop.f32.mrb[20].mxu0 }
 0x3d1   : > { %v4936_v47 = vadd.f32 %v6149_v45, %v2348_v46  ;;  %v4659_v39 = vpop.f32.mrb[21].mxu0 }
 0x3d2   : > { %v2351_v50 = vpop.f32.mrb[22].mxu0 }
 0x3d3   : > { %v2395_v53 = vmax.f32 %v4936_v47, 0.0  ;;  %v4937_v54 = vadd.f32 %v6149_v45, %v2351_v50  ;;  %v4660_v57 = vpop.f32.mrb[23].mxu0 }
 0x3d5   : > { %v2404_v15 = vmul.f32 %v2395_v53, %v5849_v17  ;;  %v2396_v59 = vmax.f32 %v4937_v54, 0.0 }
 0x3d7   : > { %v4138_v60 = vpack.c.bf16 %v2404_v15, %v2404_v15  ;;  %v2405_v52 = vmul.f32 %v2396_v59, %v5856_v33 }
 0x3d8   : > { %v2356_v27 = vpop.f32.mrb[24].mxu0 }
 0x3d9   : > { %v2442_v62 = vshrl.u32 %v4138_v60, 16  ;;  %v4139_v31 = vpack.c.bf16 %v2405_v52, %v2405_v52  ;;  %v4938_v48 = vadd.f32 %v6149_v45, %v2356_v27  ;;  %v4663_v63 = vpop.f32.mrb[25].mxu0  ;;  %v2445_v3 = vshll.u32 %v4138_v60, 16 }
 0x3da   : > { %v2359_v1 = vpop.f32.mrb[26].mxu0 }
 0x3db   : > { %v2444_v2 = vrot.slane %v2442_v62, 7  ;;  %v2450_v6 = vshrl.u32 %v4139_v31, 16  ;;  %v2397_v8 = vmax.f32 %v4938_v48, 0.0  ;;  %v4664_v51 = vpop.f32.mrb[27].mxu0  ;;  %v4939_v13 = vadd.f32 %v6149_v45, %v2359_v1  ;;  %v5298_v62 = vld [vmem:[#allocation5 + $0x280] sm:$0xff]  }
 0x3dc   : > { %v2453_v7 = vshll.u32 %v4139_v31, 16 }
 0x3dd   : > { %v2447_v26 = vor.u32 %v2445_v3, %v2444_v2  ;;  %v2452_v14 = vrot.slane %v2450_v6, 7  ;;  %v2406_v16 = vmul.f32 %v2397_v8, %v5860_v38  ;;  %v2398_v19 = vmax.f32 %v4939_v13, 0.0 }
 0x3de   : > { %v2448_v20 = vrot.slane %v2444_v2, 4 }
 0x3df   : > { %v2530_v55 = vsel %vm5864_vm2, %v2447_v26, %v2529_v18  ;;  %v2455_v21 = vor.u32 %v2453_v7, %v2452_v14  ;;  %v4140_v22 = vpack.c.bf16 %v2406_v16, %v2406_v16  ;;  %v2407_v24 = vmul.f32 %v2398_v19, %v5875_v5 }
 0x3e0   : > { %2531 = vst [vmem:[#allocation3] sm:$0xf] %v2530_v55  ;;  %v2364_v28 = vpop.f32.mrb[28].mxu0  ;;  %v2457_v46 = vrot.slane %v2452_v14, 4 }
 0x3e1   : > { %v2456_v29 = vsel %vm5588_vm11, %v2448_v20, %v2455_v21  ;;  %v2459_v32 = vshrl.u32 %v4140_v22, 16  ;;  %v4940_v36 = vadd.f32 %v6149_v45, %v2364_v28  ;;  %v4667_v37 = vpop.f32.mrb[29].mxu0  ;;  %v4141_v40 = vpack.c.bf16 %v2407_v24, %v2407_v24  ;;  %v5299_v21 = vld [vmem:[#allocation5 + $0x288] sm:$0xff]  }
 0x3e2   : > { %2532 = vst [vmem:[#allocation3 + $0x4] sm:$0xf] %v2456_v29  ;;  %v2367_v30 = vpop.f32.mrb[30].mxu0  ;;  %v2462_v23 = vshll.u32 %v4140_v22, 16 }
 0x3e3   : > { %v2461_v41 = vrot.slane %v2459_v32, 7  ;;  %v2399_v42 = vmax.f32 %v4940_v36, 0.0  ;;  %v4941_v12 = vadd.f32 %v6149_v45, %v2367_v30  ;;  %v4668_v43 = vpop.f32.mrb[31].mxu0  ;;  %v2468_v44 = vshrl.u32 %v4141_v40, 16 }
 0x3e4   : > { %v2471_v54 = vshll.u32 %v4141_v40, 16 }
 0x3e5   : > { %v2464_v47 = vor.u32 %v2462_v23, %v2461_v41  ;;  %v2408_v39 = vmul.f32 %v2399_v42, %v5882_v25  ;;  %v2400_v50 = vmax.f32 %v4941_v12, 0.0  ;;  %v2470_v53 = vrot.slane %v2468_v44, 7  ;;  %v5301_v12 = vld [vmem:[#allocation5 + $0x290] sm:$0xff]  }
 0x3e6   : > { %v2466_v60 = vrot.slane %v2461_v41, 4 }
 0x3e7   : > { %v2465_v57 = vsel %vm5588_vm11, %v2457_v46, %v2464_v47  ;;  %v4142_v15 = vpack.c.bf16 %v2408_v39, %v2408_v39  ;;  %v2409_v59 = vmul.f32 %v2400_v50, %v5887_v35  ;;  %v2473_v52 = vor.u32 %v2471_v54, %v2470_v53  ;;  %v2542_v2 = vld [vmem:[#allocation3] sm:$0xf] }
 0x3e8   : > { %2533 = vst [vmem:[#allocation3 + $0x8] sm:$0xf] %v2465_v57  ;;  %v2372_v27 = vpop.f32.mrb[32].mxu0  ;;  %v2475_v16 = vrot.slane %v2470_v53, 4  ;;  %v2918_v36 = vld [vmem:[#allocation3] sm:$0xe] }
 0x3e9   : > { %v2477_v31 = vshrl.u32 %v4142_v15, 16  ;;  %v4143_v48 = vpack.c.bf16 %v2409_v59, %v2409_v59  ;;  %v4942_v63 = vadd.f32 %v6149_v45, %v2372_v27  ;;  %v4671_v1 = vpop.f32.mrb[33].mxu0  ;;  %v2543_v3 = vld [vmem:[#allocation3 + $0x4] sm:$0xf]  ;;  %v2474_v6 = vsel %vm5588_vm11, %v2466_v60, %v2473_v52 }
 0x3ea   : > { %v2375_v8 = vpop.f32.mrb[34].mxu0  ;;  %v6175_v51 = vcombine.low %v2542_v2, %v2543_v3  ;;  %2534 = vst [vmem:[#allocation3 + $0xc] sm:$0xf] %v2474_v6  ;;  %v2480_v11 = vshll.u32 %v4142_v15, 16  ;;  %v4045_v30 = vcombine.low %v2918_v36, %v2543_v3  ;;  %v5303_v60 = vld [vmem:[#allocation5 + $0x298] sm:$0xff]  }
 0x3eb   : > { %v2479_v13 = vrot.slane %v2477_v31, 7  ;;  %v2486_v26 = vshrl.u32 %v4143_v48, 16  ;;  %v2401_v14 = vmax.f32 %v4942_v63, 0.0  ;;  %v4672_v7 = vpop.f32.mrb[35].mxu0  ;;  %v4943_v18 = vadd.f32 %v6149_v45, %v2375_v8  ;;  %v5304_v8 = vld [vmem:[#allocation5 + $0x2a0] sm:$0xff]  }
 0x3ec   : > { %4694 = vmatmul.mubr.bf16.vlgmr.msra.gmra.mrb[40].mxu1 %v6175_v51  ;;  %v2489_v20 = vshll.u32 %v4143_v48, 16  ;;  %v2939_v57 = vrot.slane %v4045_v30, 1  ;;  %v2746_v30 = vshrl.u32 %v6175_v51, 16 }
 0x3ed   : > { %v2482_v19 = vor.u32 %v2480_v11, %v2479_v13  ;;  %v2488_v58 = vrot.slane %v2486_v26, 7  ;;  %v2410_v55 = vmul.f32 %v2401_v14, %v5902_v61  ;;  %4714 = vmatpush3.bf16.msra.mxu1 %v5298_v62  ;;  %4697 = vmatprep.mubr.msk.bf16.mxu1 %vm6564_vm7, %v5450_v0  ;;  %v2402_v22 = vmax.f32 %v4943_v18, 0.0  ;;  %v5306_v18 = vld [vmem:[#allocation5 + $0x2a8] sm:$0xff]  }
 0x3ee   : > { %4715 = vmatprep.subr.bf16.mxu1 %v5450_v0  ;;  %v2484_v28 = vrot.slane %v2479_v13, 4 }
 0x3ef   : > { %v2483_v24 = vsel %vm5588_vm11, %v2475_v16, %v2482_v19  ;;  %v2491_v29 = vor.u32 %v2489_v20, %v2488_v58  ;;  %v4144_v32 = vpack.c.bf16 %v2410_v55, %v2410_v55  ;;  %v2411_v37 = vmul.f32 %v2402_v22, %v5911_v10  ;;  %v2539_v20 = vld [vmem:[#allocation3 + $0x20] sm:$0xf] }
 0x3f0   : > { %2535 = vst [vmem:[#allocation3 + $0x10] sm:$0xf] %v2483_v24  ;;  %v2380_v40 = vpop.f32.mrb[36].mxu0  ;;  %v2493_v15 = vrot.slane %v2488_v58, 4 }
 0x3f1   : > { %v2492_v4 = vsel %vm5588_vm11, %v2484_v28, %v2491_v29  ;;  %v2495_v41 = vshrl.u32 %v4144_v32, 16  ;;  %v4944_v23 = vadd.f32 %v6149_v45, %v2380_v40  ;;  %v4675_v42 = vpop.f32.mrb[37].mxu0  ;;  %4716 = vmatpush3.bf16.msra.mxu1 %v5299_v21  ;;  %v4145_v43 = vpack.c.bf16 %v2411_v37, %v2411_v37  ;;  %v6189_v46 = vld [vmem:[#allocation3 + $0x8] sm:$0xff]   ;;  %v5307_v21 = vld [vmem:[#allocation5 + $0x2b0] sm:$0xff]   ;;  %v5309_v28 = vld [vmem:[#allocation5 + $0x2b8] sm:$0xff]  }
 0x3f2   : > { %2536 = vst [vmem:[#allocation3 + $0x14] sm:$0xf] %v2492_v4  ;;  %v2383_v44 = vpop.f32.mrb[38].mxu0  ;;  %4717 = vmatprep.subr.bf16.mxu1 %v5450_v0  ;;  %v2498_v39 = vshll.u32 %v4144_v32, 16  ;;  %v2940_v52 = vrot.slane %v6189_v46, 1  ;;  %v2748_v32 = vshll.u32 %v6175_v51, 16 }
 0x3f3   : > { %v2497_v47 = vrot.slane %v2495_v41, 7  ;;  %v2403_v50 = vmax.f32 %v4944_v23, 0.0  ;;  %v4676_v53 = vpop.f32.mrb[39].mxu0  ;;  %v2504_v54 = vshrl.u32 %v4145_v43, 16  ;;  %v2507_v62 = vshll.u32 %v4145_v43, 16  ;;  %v5310_v23 = vld [vmem:[#allocation5 + $0x2c0] sm:$0xff]  }
 0x3f4   : > { %4698 = vmatmul.mubr.bf16.gmra.mrb[44].mxu1 %v6189_v46  ;;  %v6201_v63 = vsel %vm829_vm3, %v2939_v57, %v2940_v52  ;;  %v2753_v37 = vshll.u32 %v6189_v46, 16  ;;  %v2750_v40 = vrot.slane %v2748_v32, 1  ;;  %v5311_v43 = vld [vmem:[#allocation5 + $0x2c8] sm:$0xff]   ;;  %v2757_v44 = vshrl.u32 %v6189_v46, 16 }
 0x3f5   : > { %v2500_v45 = vor.u32 %v2498_v39, %v2497_v47  ;;  %v2412_v59 = vmul.f32 %v2403_v50, %v5921_v34  ;;  %4718 = vmatpush3.bf16.msra.mxu1 %v5301_v12  ;;  %4701 = vmatprep.mubr.msk.bf16.mxu1 %vm6564_vm7, %v5450_v0  ;;  %v2506_v27 = vrot.slane %v2504_v54, 7  ;;  %v2502_v1 = vrot.slane %v2497_v47, 4  ;;  %v5312_v39 = vld [vmem:[#allocation5 + $0x2d0] sm:$0xff]   ;;  %v5313_v54 = vld [vmem:[#allocation5 + $0x2d8] sm:$0xff]  }
 0x3f6   : > { %4719 = vmatprep.subr.bf16.mxu1 %v5450_v0  ;;  %v2755_v4 = vrot.slane %v2753_v37, 1  ;;  %v2751_v41 = vor.u32 %v2750_v40, %v2746_v30 }
 0x3f7   : > { %v2501_v31 = vsel %vm5588_vm11, %v2493_v15, %v2500_v45  ;;  %v4146_v48 = vpack.c.bf16 %v2412_v59, %v2412_v59  ;;  %v2509_v2 = vor.u32 %v2507_v62, %v2506_v27  ;;  %v2511_v7 = vrot.slane %v2506_v27, 4  ;;  %v5314_v59 = vld [vmem:[#allocation5 + $0x2e0] sm:$0xff]   ;;  %v5316_v27 = vld [vmem:[#allocation5 + $0x2e8] sm:$0xff]  }
 0x3f8   : > { %2537 = vst [vmem:[#allocation3 + $0x18] sm:$0xf] %v2501_v31  ;;  %v2756_v42 = vsel %vm634_vm14, %v2751_v41, %v2755_v4  ;;  %v2759_v51 = vor.u32 %v2757_v44, %v2755_v4 }
 0x3f9   : > { %v2513_v3 = vshrl.u32 %v4146_v48, 16  ;;  %v6203_v6 = vld [vmem:[#allocation3 + $0x10] sm:$0xff]   ;;  %4720 = vmatpush3.bf16.msra.mxu1 %v5303_v60  ;;  %v2510_v13 = vsel %vm5588_vm11, %v2502_v1, %v2509_v2  ;;  %v2516_v26 = vshll.u32 %v4146_v48, 16  ;;  %v5317_v1 = vld [vmem:[#allocation5 + $0x2f0] sm:$0xff]  }
 0x3fa   : > { %4721 = vmatprep.subr.bf16.mxu1 %v5450_v0  ;;  %2538 = vst [vmem:[#allocation3 + $0x1c] sm:$0xf] %v2510_v13  ;;  %v2942_v14 = vrot.slane %v6203_v6, 1  ;;  %v2761_v12 = vshll.u32 %v6203_v6, 16  ;;  %v2765_v46 = vshrl.u32 %v6203_v6, 16 }
 0x3fb   : > { %v2515_v11 = vrot.slane %v2513_v3, 7  ;;  %v5318_v3 = vld [vmem:[#allocation5 + $0x2f8] sm:$0xff]  }
 0x3fc   : > { %4702 = vmatmul.mubr.bf16.gmra.mrb[48].mxu1 %v6203_v6  ;;  %v6213_v19 = vsel %vm829_vm3, %v2940_v52, %v2942_v14  ;;  %v2763_v47 = vrot.slane %v2761_v12, 1 }
 0x3fd   : > { %v2518_v16 = vor.u32 %v2516_v26, %v2515_v11  ;;  %4722 = vmatpush3.bf16.msra.mxu1 %v5304_v8  ;;  %4705 = vmatprep.mubr.msk.bf16.mxu1 %vm6564_vm7, %v5450_v0  ;;  %v5324_v26 = vld [vmem:[#allocation5 + $0x320] sm:$0xff]  }
 0x3fe   : > { %4723 = vmatprep.subr.bf16.mxu1 %v5450_v0  ;;  %v2764_v50 = vsel %vm634_vm14, %v2759_v51, %v2763_v47  ;;  %v2767_v45 = vor.u32 %v2765_v46, %v2763_v47 }
 0x3ff   : > { %v2519_v58 = vsel %vm5588_vm11, %v2511_v7, %v2518_v16  ;;  %v5326_v7 = vld [vmem:[#allocation5 + $0x330] sm:$0xff]   ;;  %v5327_v16 = vld [vmem:[#allocation5 + $0x338] sm:$0xff]  }
 0x400   : > { %v2540_v55 = vsel %vm5938_vm13, %v2519_v58, %v2539_v20  ;;  %v6295_v58 = vld [vmem:[#allocation5 + $0x390] sm:$0xff]   ;;  %v6299_v20 = vld [vmem:[#allocation5 + $0x398] sm:$0xff]  }
 0x401   : > { %2541 = vst [vmem:[#allocation3 + $0x20] sm:$0xf] %v2540_v55  ;;  %4724 = vmatpush3.bf16.msra.mxu1 %v5306_v18  ;;  %v6220_v22 = vld [vmem:[#allocation3 + $0x18] sm:$0xff]   ;;  %v6287_v18 = vld [vmem:[#allocation5 + $0x380] sm:$0xff]  }
 0x402   : > { %4725 = vmatprep.subr.bf16.mxu1 %v5450_v0  ;;  %v2944_v24 = vrot.slane %v6220_v22, 1  ;;  %v2769_v53 = vshll.u32 %v6220_v22, 16  ;;  %v2773_v62 = vshrl.u32 %v6220_v22, 16  ;;  %v6303_v55 = vld [vmem:[#allocation5 + $0x3a0] sm:$0xff]  }
 0x404   : > { %4706 = vmatmul.mubr.bf16.gmra.mrb[52].mxu1 %v6220_v22  ;;  %v6231_v29 = vsel %vm829_vm3, %v2942_v14, %v2944_v24  ;;  %v2771_v57 = vrot.slane %v2769_v53, 1  ;;  %v5325_v14 = vld [vmem:[#allocation5 + $0x328] sm:$0xff]   ;;  %v6310_v22 = vld [vmem:[#allocation5 + $0x3b0] sm:$0xff]  }
 0x405   : > { %4709 = vmatprep.mubr.msk.bf16.mxu1 %vm6564_vm7, %v5450_v0  ;;  %4726 = vmatpush3.bf16.msra.mxu1 %v5307_v21  ;;  %v6307_v21 = vld [vmem:[#allocation5 + $0x3a8] sm:$0xff]  }
 0x406   : > { %4727 = vmatprep.subr.bf16.mxu1 %v5450_v0  ;;  %v2772_v60 = vsel %vm634_vm14, %v2767_v45, %v2771_v57  ;;  %v2775_v48 = vor.u32 %v2773_v62, %v2771_v57 }
 0x408   : > { %v5308_v36 = vld [vmem:[#allocation3 + $0x20] ss:$0 sps:$4 sm:$0x77]  }
 0x409   : > { %4728 = vmatpush3.bf16.msra.mxu1 %v5309_v28  ;;  %v5315_v15 = vld [vmem:[#allocation3 + $0x20] ss:$0 sps:$4 sm:$0xff]   ;;  %v6321_v28 = vld [vmem:[%s6524_s2 + $0x3] ss:$0 sm:$0xff] }
 0x40a   : > { %4749 = vmatprep.subr.bf16.mxu1 %v5450_v0  ;;  %v2777_v52 = vshll.u32 %v5315_v15, 16  ;;  %v2781_v6 = vshrl.u32 %v5315_v15, 16  ;;  %v2946_v13 = vrot.slane %v5315_v15, 1 }
 0x40c   : > { %4710 = vmatmul.mubr.bf16.gmra.mrb[56].mxu1 %v5308_v36  ;;  %v2779_v31 = vrot.slane %v2777_v52, 1  ;;  %v2947_v11 = vsel %vm829_vm3, %v2944_v24, %v2946_v13  ;;  %v6314_v24 = vld [vmem:[#allocation5 + $0x3b8] sm:$0xff]  }
 0x40d   : > { %4729 = vmatprep.mubr.msk.bf16.mxu1 %vm6564_vm7, %v5450_v0 }
 0x40e   : > { %v2780_v2 = vsel %vm634_vm14, %v2775_v48, %v2779_v31  ;;  %v2783_v8 = vor.u32 %v2781_v6, %v2779_v31 }
 0x414   : > { %4730 = vmatmul.mubr.bf16.vlgmr.msra.gmra.mrb[40].mxu1 %v2756_v42 }
 0x415   : > { %4750 = vmatpush3.bf16.msra.mxu1 %v5310_v23  ;;  %4733 = vmatprep.mubr.msk.bf16.mxu1 %vm6564_vm7, %v5450_v0 }
 0x416   : > { %4751 = vmatprep.subr.bf16.mxu1 %v5450_v0 }
 0x419   : > { %4752 = vmatpush3.bf16.msra.mxu1 %v5311_v43 }
 0x41a   : > { %4753 = vmatprep.subr.bf16.mxu1 %v5450_v0 }
 0x41c   : > { %4734 = vmatmul.mubr.bf16.gmra.mrb[44].mxu1 %v2764_v50 }
 0x41d   : > { %4754 = vmatpush3.bf16.msra.mxu1 %v5312_v39  ;;  %4737 = vmatprep.mubr.msk.bf16.mxu1 %vm6564_vm7, %v5450_v0 }
 0x41e   : > { %4755 = vmatprep.subr.bf16.mxu1 %v5450_v0 }
 0x421   : > { %4756 = vmatpush3.bf16.msra.mxu1 %v5313_v54 }
 0x422   : > { %4757 = vmatprep.subr.bf16.mxu1 %v5450_v0 }
 0x424   : > { %4738 = vmatmul.mubr.bf16.gmra.mrb[48].mxu1 %v2772_v60 }
 0x425   : > { %4758 = vmatpush3.bf16.msra.mxu1 %v5314_v59  ;;  %4741 = vmatprep.mubr.msk.bf16.mxu1 %vm6564_vm7, %v5450_v0 }
 0x426   : > { %4759 = vmatprep.subr.bf16.mxu1 %v5450_v0 }
 0x429   : > { %4760 = vmatpush3.bf16.msra.mxu1 %v5316_v27 }
 0x42a   : > { %4761 = vmatprep.subr.bf16.mxu1 %v5450_v0 }
 0x42c   : > { %4742 = vmatmul.mubr.bf16.gmra.mrb[52].mxu1 %v2780_v2 }
 0x42d   : > { %4745 = vmatprep.mubr.msk.bf16.mxu1 %vm6564_vm7, %v5450_v0  ;;  %4762 = vmatpush3.bf16.msra.mxu1 %v5317_v1 }
 0x42e   : > { %4763 = vmatprep.subr.bf16.mxu1 %v5450_v0 }
 0x431   : > { %4764 = vmatpush3.bf16.msra.mxu1 %v5318_v3 }
 0x432   : > { %4893 = vmatprep.subr.bf16.mxu1 %v5450_v0 }
 0x434   : > { %4746 = vmatmul.mubr.bf16.gmra.mrb[56].mxu1 %v2783_v8 }
 0x435   : > { %4765 = vmatprep.mubr.msk.bf16.mxu1 %vm6564_vm7, %v5450_v0 }
 0x43c   : > { %4766 = vmatmul.mubr.bf16.vlgmr.msra.gmra.mrb[40].mxu1 %v6201_v63  ;;  %v5323_v63 = vld [vmem:[#allocation5 + $0x318] sm:$0xff]  }
 0x43d   : > { %4769 = vmatprep.mubr.msk.bf16.mxu1 %vm6564_vm7, %v5450_v0  ;;  %4792 = vmatpush3.bf16.msra.mxu0 %v5323_v63 }
 0x43e   : > { %4793 = vmatprep.subr.bf16.mxu0 %v5450_v0  ;;  %4901 = vmatpush3.bf16.msra.mxu1 %v6287_v18 }
 0x43f   : > { %4894 = vmatprep.subr.bf16.mxu1 %v5450_v0 }
 0x441   : > { %4794 = vmatpush3.bf16.msra.mxu0 %v5324_v26 }
 0x442   : > { %4795 = vmatprep.subr.bf16.mxu0 %v5450_v0 }
 0x444   : > { %4770 = vmatmul.mubr.bf16.gmra.mrb[44].mxu1 %v6213_v19  ;;  %v6291_v19 = vld [vmem:[#allocation5 + $0x388] sm:$0xff]  }
 0x445   : > { %4773 = vmatprep.mubr.msk.bf16.mxu1 %vm6564_vm7, %v5450_v0  ;;  %4796 = vmatpush3.bf16.msra.mxu0 %v5325_v14 }
 0x446   : > { %4797 = vmatprep.subr.bf16.mxu0 %v5450_v0  ;;  %4902 = vmatpush3.bf16.msra.mxu1 %v6291_v19 }
 0x447   : > { %4895 = vmatprep.subr.bf16.mxu1 %v5450_v0 }
 0x449   : > { %4798 = vmatpush3.bf16.msra.mxu0 %v5326_v7 }
 0x44a   : > { %4799 = vmatprep.subr.bf16.mxu0 %v5450_v0  ;;  %4903 = vmatpush3.bf16.msra.mxu1 %v6295_v58 }
 0x44b   : > { %4896 = vmatprep.subr.bf16.mxu1 %v5450_v0 }
 0x44c   : > { %4774 = vmatmul.mubr.bf16.gmra.mrb[48].mxu1 %v6231_v29 }
 0x44d   : > { %4777 = vmatprep.mubr.msk.bf16.mxu1 %vm6564_vm7, %v5450_v0  ;;  %4800 = vmatpush3.bf16.msra.mxu0 %v5327_v16 }
 0x44e   : > { %4821 = vmatprep.subr.bf16.mxu0 %v5450_v0  ;;  %4904 = vmatpush3.bf16.msra.mxu1 %v6299_v20 }
 0x44f   : > { %4897 = vmatprep.subr.bf16.mxu1 %v5450_v0 }
 0x452   : > { %4905 = vmatpush3.bf16.msra.mxu1 %v6303_v55 }
 0x453   : > { %4898 = vmatprep.subr.bf16.mxu1 %v5450_v0 }
 0x454   : > { %4778 = vmatmul.mubr.bf16.gmra.mrb[52].mxu1 %v2947_v11 }
 0x455   : > { %4781 = vmatprep.mubr.msk.bf16.mxu1 %vm6564_vm7, %v5450_v0 }
 0x456   : > { %4906 = vmatpush3.bf16.msra.mxu1 %v6307_v21 }
 0x457   : > { %4899 = vmatprep.subr.bf16.mxu1 %v5450_v0 }
 0x45a   : > { %4907 = vmatpush3.bf16.msra.mxu1 %v6310_v22 }
 0x45b   : > { %4900 = vmatprep.subr.bf16.mxu1 %v5450_v0 }
 0x45c   : > { %4782 = vmatmul.mubr.bf16.gmra.mrb[56].mxu1 %v2946_v13 }
 0x45d   : > { %4885 = vmatprep.mubr.msk.bf16.mxu1 %vm6564_vm7, %v5450_v0 }
 0x45e   : > { %4908 = vmatpush3.bf16.msra.mxu1 %v6314_v24 }
 0x50f   : > { %v3035_v29 = vpop.f32.mrb[40].mxu1 }
 0x510   : > { %v4945_v32 = vadd.f32 %v6321_v28, %v3035_v29  ;;  %v4767_v36 = vpop.f32.mrb[41].mxu1 }
 0x511   : > { %v3038_v37 = vpop.f32.mrb[42].mxu1 }
 0x512   : > { %v3082_v40 = vmax.f32 %v4945_v32, 0.0  ;;  %v4946_v30 = vadd.f32 %v6321_v28, %v3038_v37  ;;  %v4768_v4 = vpop.f32.mrb[43].mxu1 }
 0x514   : > { %v3091_v41 = vmul.f32 %v3082_v40, %v5849_v17  ;;  %v3083_v23 = vmax.f32 %v4946_v30, 0.0 }
 0x516   : > { %v4147_v42 = vpack.c.bf16 %v3091_v41, %v3091_v41  ;;  %v3092_v12 = vmul.f32 %v3083_v23, %v5856_v33  ;;  %v3216_v33 = vld [vmem:[#allocation4] sm:$0xf] }
 0x517   : > { %v3043_v43 = vpop.f32.mrb[44].mxu1 }
 0x518   : > { %v3129_v44 = vshrl.u32 %v4147_v42, 16  ;;  %v4148_v47 = vpack.c.bf16 %v3092_v12, %v3092_v12  ;;  %v4947_v51 = vadd.f32 %v6321_v28, %v3043_v43  ;;  %v4771_v39 = vpop.f32.mrb[45].mxu1  ;;  %v3132_v54 = vshll.u32 %v4147_v42, 16 }
 0x519   : > { %v3046_v50 = vpop.f32.mrb[46].mxu1 }
 0x51a   : > { %v3131_v53 = vrot.slane %v3129_v44, 7  ;;  %v3137_v46 = vshrl.u32 %v4148_v47, 16  ;;  %v3084_v57 = vmax.f32 %v4947_v51, 0.0  ;;  %v4772_v15 = vpop.f32.mrb[47].mxu1  ;;  %v4948_v45 = vadd.f32 %v6321_v28, %v3046_v50  ;;  %v5329_v44 = vld [vmem:[#allocation5 + $0x340] sm:$0xff]  }
 0x51b   : > { %v3140_v60 = vshll.u32 %v4148_v47, 16 }
 0x51c   : > { %v3134_v59 = vor.u32 %v3132_v54, %v3131_v53  ;;  %v3139_v17 = vrot.slane %v3137_v46, 7  ;;  %v3093_v52 = vmul.f32 %v3084_v57, %v5860_v38  ;;  %v3085_v27 = vmax.f32 %v4948_v45, 0.0 }
 0x51d   : > { %v3135_v62 = vrot.slane %v3131_v53, 4 }
 0x51e   : > { %v3217_v31 = vsel %vm5864_vm2, %v3134_v59, %v3216_v33  ;;  %v3142_v48 = vor.u32 %v3140_v60, %v3139_v17  ;;  %v4149_v1 = vpack.c.bf16 %v3093_v52, %v3093_v52  ;;  %v3094_v2 = vmul.f32 %v3085_v27, %v5875_v5 }
 0x51f   : > { %3218 = vst [vmem:[#allocation4] sm:$0xf] %v3217_v31  ;;  %v3051_v3 = vpop.f32.mrb[48].mxu1  ;;  %v3144_v32 = vrot.slane %v3139_v17, 4 }
 0x520   : > { %v3143_v6 = vsel %vm5588_vm11, %v3135_v62, %v3142_v48  ;;  %v3146_v8 = vshrl.u32 %v4149_v1, 16  ;;  %v4949_v13 = vadd.f32 %v6321_v28, %v3051_v3  ;;  %v4775_v11 = vpop.f32.mrb[49].mxu1  ;;  %v4150_v38 = vpack.c.bf16 %v3094_v2, %v3094_v2  ;;  %v5331_v48 = vld [vmem:[#allocation5 + $0x348] sm:$0xff]  }
 0x521   : > { %3219 = vst [vmem:[#allocation4 + $0x4] sm:$0xf] %v3143_v6  ;;  %v3054_v63 = vpop.f32.mrb[50].mxu1  ;;  %v3149_v14 = vshll.u32 %v4149_v1, 16 }
 0x522   : > { %v3148_v26 = vrot.slane %v3146_v8, 7  ;;  %v3086_v49 = vmax.f32 %v4949_v13, 0.0  ;;  %v4950_v7 = vadd.f32 %v6321_v28, %v3054_v63  ;;  %v4776_v16 = vpop.f32.mrb[51].mxu1  ;;  %v3155_v29 = vshrl.u32 %v4150_v38, 16 }
 0x523   : > { %v3158_v30 = vshll.u32 %v4150_v38, 16 }
 0x524   : > { %v3151_v5 = vor.u32 %v3149_v14, %v3148_v26  ;;  %v3095_v36 = vmul.f32 %v3086_v49, %v5882_v25  ;;  %v3087_v37 = vmax.f32 %v4950_v7, 0.0  ;;  %v3157_v40 = vrot.slane %v3155_v29, 7  ;;  %v5334_v7 = vld [vmem:[#allocation5 + $0x350] sm:$0xff]  }
 0x525   : > { %v3153_v42 = vrot.slane %v3148_v26, 4 }
 0x526   : > { %v3152_v4 = vsel %vm5588_vm11, %v3144_v32, %v3151_v5  ;;  %v4151_v41 = vpack.c.bf16 %v3095_v36, %v3095_v36  ;;  %v3096_v23 = vmul.f32 %v3087_v37, %v5887_v35  ;;  %v3160_v12 = vor.u32 %v3158_v30, %v3157_v40  ;;  %v3229_v25 = vld [vmem:[#allocation4] sm:$0xf] }
 0x527   : > { %3220 = vst [vmem:[#allocation4 + $0x8] sm:$0xf] %v3152_v4  ;;  %v3059_v43 = vpop.f32.mrb[52].mxu1  ;;  %v3162_v60 = vrot.slane %v3157_v40, 4  ;;  %v3605_v13 = vld [vmem:[#allocation4] sm:$0xe] }
 0x528   : > { %v3164_v47 = vshrl.u32 %v4151_v41, 16  ;;  %v4152_v51 = vpack.c.bf16 %v3096_v23, %v3096_v23  ;;  %v4951_v39 = vadd.f32 %v6321_v28, %v3059_v43  ;;  %v4779_v50 = vpop.f32.mrb[53].mxu1  ;;  %v3230_v53 = vld [vmem:[#allocation4 + $0x4] sm:$0xf]  ;;  %v3161_v54 = vsel %vm5588_vm11, %v3153_v42, %v3160_v12  ;;  %v5338_v23 = vld [vmem:[#allocation5 + $0x358] sm:$0xff]  }
 0x529   : > { %v3062_v46 = vpop.f32.mrb[54].mxu1  ;;  %v6344_v57 = vcombine.low %v3229_v25, %v3230_v53  ;;  %3221 = vst [vmem:[#allocation4 + $0xc] sm:$0xf] %v3161_v54  ;;  %v3167_v15 = vshll.u32 %v4151_v41, 16 }
 0x52a   : > { %v3166_v35 = vrot.slane %v3164_v47, 7  ;;  %v3173_v45 = vshrl.u32 %v4152_v51, 16  ;;  %v3088_v59 = vmax.f32 %v4951_v39, 0.0  ;;  %v4780_v17 = vpop.f32.mrb[55].mxu1  ;;  %v4952_v52 = vadd.f32 %v6321_v28, %v3062_v46 }
 0x52b   : > { %4802 = vmatmul.mubr.bf16.vlgmr.msra.gmra.mrb[40].mxu0 %v6344_v57  ;;  %v3176_v62 = vshll.u32 %v4152_v51, 16  ;;  %v5343_v17 = vld [vmem:[#allocation5 + $0x368] sm:$0xff]   ;;  %v3435_v56 = vshll.u32 %v6344_v57, 16 }
 0x52c   : > { %v3169_v33 = vor.u32 %v3167_v15, %v3166_v35  ;;  %v3175_v27 = vrot.slane %v3173_v45, 7  ;;  %v3097_v31 = vmul.f32 %v3088_v59, %v5902_v61  ;;  %4822 = vmatpush3.bf16.msra.mxu0 %v5329_v44  ;;  %4805 = vmatprep.mubr.msk.bf16.mxu0 %vm6564_vm7, %v5450_v0  ;;  %v3089_v1 = vmax.f32 %v4952_v52, 0.0 }
 0x52d   : > { %4823 = vmatprep.subr.bf16.mxu0 %v5450_v0  ;;  %v3171_v3 = vrot.slane %v3166_v35, 4  ;;  %v4087_v61 = vcombine.low %v3605_v13, %v3230_v53  ;;  %v5340_v53 = vld [vmem:[#allocation5 + $0x360] sm:$0xff]   ;;  %v3437_v13 = vrot.slane %v3435_v56, 1 }
 0x52e   : > { %v3170_v2 = vsel %vm5588_vm11, %v3162_v60, %v3169_v33  ;;  %v3178_v6 = vor.u32 %v3176_v62, %v3175_v27  ;;  %v4153_v8 = vpack.c.bf16 %v3097_v31, %v3097_v31  ;;  %v3098_v11 = vmul.f32 %v3089_v1, %v5911_v10  ;;  %v3226_v33 = vld [vmem:[#allocation4 + $0x20] sm:$0xf]  ;;  %v5345_v62 = vld [vmem:[#allocation5 + $0x370] sm:$0xff]  }
 0x52f   : > { %3222 = vst [vmem:[#allocation4 + $0x10] sm:$0xf] %v3170_v2  ;;  %v3067_v38 = vpop.f32.mrb[56].mxu1  ;;  %v3626_v30 = vrot.slane %v4087_v61, 1  ;;  %v3180_v4 = vrot.slane %v3175_v27, 4 }
 0x530   : > { %v3179_v63 = vsel %vm5588_vm11, %v3171_v3, %v3178_v6  ;;  %v3182_v26 = vshrl.u32 %v4153_v8, 16  ;;  %v4953_v14 = vadd.f32 %v6321_v28, %v3067_v38  ;;  %v4783_v49 = vpop.f32.mrb[57].mxu1  ;;  %4824 = vmatpush3.bf16.msra.mxu0 %v5331_v48  ;;  %v4154_v16 = vpack.c.bf16 %v3098_v11, %v3098_v11  ;;  %v6358_v32 = vld [vmem:[#allocation4 + $0x8] sm:$0xff]   ;;  %v5349_v48 = vld [vmem:[#allocation5 + $0x378] sm:$0xff]  }
 0x531   : > { %3223 = vst [vmem:[#allocation4 + $0x14] sm:$0xf] %v3179_v63  ;;  %v3070_v29 = vpop.f32.mrb[58].mxu1  ;;  %4825 = vmatprep.subr.bf16.mxu0 %v5450_v0  ;;  %v3185_v10 = vshll.u32 %v4153_v8, 16  ;;  %v3627_v42 = vrot.slane %v6358_v32, 1  ;;  %v3440_v6 = vshll.u32 %v6358_v32, 16 }
 0x532   : > { %v3184_v5 = vrot.slane %v3182_v26, 7  ;;  %v3090_v36 = vmax.f32 %v4953_v14, 0.0  ;;  %v4784_v37 = vpop.f32.mrb[59].mxu1  ;;  %v3191_v40 = vshrl.u32 %v4154_v16, 16  ;;  %v3194_v43 = vshll.u32 %v4154_v16, 16 }
 0x533   : > { %4806 = vmatmul.mubr.bf16.gmra.mrb[44].mxu0 %v6358_v32  ;;  %v6370_v51 = vsel %vm829_vm3, %v3626_v30, %v3627_v42  ;;  %v3433_v11 = vshrl.u32 %v6344_v57, 16  ;;  %v3442_v38 = vrot.slane %v3440_v6, 1  ;;  %v3444_v57 = vshrl.u32 %v6358_v32, 16 }
 0x534   : > { %v3187_v28 = vor.u32 %v3185_v10, %v3184_v5  ;;  %v3099_v41 = vmul.f32 %v3090_v36, %v5921_v34  ;;  %4826 = vmatpush3.bf16.msra.mxu0 %v5334_v7  ;;  %4809 = vmatprep.mubr.msk.bf16.mxu0 %vm6564_vm7, %v5450_v0  ;;  %v3193_v12 = vrot.slane %v3191_v40, 7  ;;  %v3189_v39 = vrot.slane %v3184_v5, 4 }
 0x535   : > { %4827 = vmatprep.subr.bf16.mxu0 %v5450_v0  ;;  %v3438_v61 = vor.u32 %v3437_v13, %v3433_v11  ;;  %v3446_v49 = vor.u32 %v3444_v57, %v3442_v38 }
 0x536   : > { %v3188_v44 = vsel %vm5588_vm11, %v3180_v4, %v3187_v28  ;;  %v4155_v47 = vpack.c.bf16 %v3099_v41, %v3099_v41  ;;  %v3196_v34 = vor.u32 %v3194_v43, %v3193_v12  ;;  %v3198_v45 = vrot.slane %v3193_v12, 4 }
 0x537   : > { %3224 = vst [vmem:[#allocation4 + $0x18] sm:$0xf] %v3188_v44  ;;  %v3443_v63 = vsel %vm634_vm14, %v3438_v61, %v3442_v38 }
 0x538   : > { %v3200_v50 = vshrl.u32 %v4155_v47, 16  ;;  %v6372_v25 = vld [vmem:[#allocation4 + $0x10] sm:$0xff]   ;;  %4828 = vmatpush3.bf16.msra.mxu0 %v5338_v23  ;;  %v3197_v54 = vsel %vm5588_vm11, %v3189_v39, %v3196_v34  ;;  %v3203_v35 = vshll.u32 %v4155_v47, 16 }
 0x539   : > { %4829 = vmatprep.subr.bf16.mxu0 %v5450_v0  ;;  %3225 = vst [vmem:[#allocation4 + $0x1c] sm:$0xf] %v3197_v54  ;;  %v3629_v15 = vrot.slane %v6372_v25, 1  ;;  %v3448_v26 = vshll.u32 %v6372_v25, 16 }
 0x53a   : > { %v3202_v46 = vrot.slane %v3200_v50, 7 }
 0x53b   : > { %4810 = vmatmul.mubr.bf16.gmra.mrb[48].mxu0 %v6372_v25  ;;  %v6384_v60 = vsel %vm829_vm3, %v3627_v42, %v3629_v15  ;;  %v3450_v14 = vrot.slane %v3448_v26, 1  ;;  %v4064_v42 = vld [vmem:[%s6524_s2 + $0x4] ss:$0 sm:$0xff] }
 0x53c   : > { %v3205_v59 = vor.u32 %v3203_v35, %v3202_v46  ;;  %4830 = vmatpush3.bf16.msra.mxu0 %v5340_v53  ;;  %4813 = vmatprep.mubr.msk.bf16.mxu0 %vm6564_vm7, %v5450_v0 }
 0x53d   : > { %4831 = vmatprep.subr.bf16.mxu0 %v5450_v0  ;;  %v3451_v7 = vsel %vm634_vm14, %v3446_v49, %v3450_v14 }
 0x53e   : > { %v3206_v52 = vsel %vm5588_vm11, %v3198_v45, %v3205_v59 }
 0x53f   : > { %v3227_v27 = vsel %vm5938_vm13, %v3206_v52, %v3226_v33 }
 0x540   : > { %3228 = vst [vmem:[#allocation4 + $0x20] sm:$0xf] %v3227_v27  ;;  %4832 = vmatpush3.bf16.msra.mxu0 %v5343_v17  ;;  %v6391_v31 = vld [vmem:[#allocation4 + $0x18] sm:$0xff]  }
 0x541   : > { %4833 = vmatprep.subr.bf16.mxu0 %v5450_v0  ;;  %v3631_v2 = vrot.slane %v6391_v31, 1  ;;  %v3456_v16 = vshll.u32 %v6391_v31, 16 }
 0x543   : > { %4814 = vmatmul.mubr.bf16.gmra.mrb[52].mxu0 %v6391_v31  ;;  %v3458_v29 = vrot.slane %v3456_v16, 1 }
 0x544   : > { %4817 = vmatprep.mubr.msk.bf16.mxu0 %vm6564_vm7, %v5450_v0  ;;  %4834 = vmatpush3.bf16.msra.mxu0 %v5345_v62 }
 0x545   : > { %4835 = vmatprep.subr.bf16.mxu0 %v5450_v0 }
 0x547   : > { %v5348_v9 = vld [vmem:[#allocation4 + $0x20] ss:$0 sps:$4 sm:$0xff]  }
 0x548   : > { %4836 = vmatpush3.bf16.msra.mxu0 %v5349_v48  ;;  %v5347_v1 = vld [vmem:[#allocation4 + $0x20] ss:$0 sps:$4 sm:$0x77]   ;;  %v3633_v3 = vrot.slane %v5348_v9, 1  ;;  %v3464_v5 = vshll.u32 %v5348_v9, 16 }
 0x549   : > { %4857 = vmatprep.subr.bf16.mxu0 %v5450_v0 }
 0x54a   : > { %v3634_v8 = vsel %vm829_vm3, %v3631_v2, %v3633_v3  ;;  %v3466_v10 = vrot.slane %v3464_v5, 1 }
 0x54b   : > { %4818 = vmatmul.mubr.bf16.gmra.mrb[56].mxu0 %v5347_v1  ;;  %4886 = vmatmul.mubr.bf16.vlgmr.msra.gmra.mrb[60].mxu1 %v3634_v8 }
 0x54c   : > { %4837 = vmatprep.mubr.msk.bf16.mxu0 %vm6564_vm7, %v5450_v0  ;;  %4889 = vmatprep.mubr.msk.bf16.mxu1 %vm6564_vm7, %v5450_v0 }
 0x553   : > { %4838 = vmatmul.mubr.bf16.vlgmr.msra.gmra.mrb[40].mxu0 %v3443_v63  ;;  %4890 = vmatmul.mubr.bf16.gmra.mrb[64].mxu1 %v3633_v3 }
 0x554   : > { %4858 = vmatpush3.bf16.msra.mxu0 %v6287_v18  ;;  %4841 = vmatprep.mubr.msk.bf16.mxu0 %vm6564_vm7, %v5450_v0  ;;  %v3452_v18 = vshrl.u32 %v6372_v25, 16 }
 0x555   : > { %4859 = vmatprep.subr.bf16.mxu0 %v5450_v0 }
 0x556   : > { %v3454_v32 = vor.u32 %v3452_v18, %v3450_v14 }
 0x558   : > { %4860 = vmatpush3.bf16.msra.mxu0 %v6291_v19  ;;  %v3459_v19 = vsel %vm634_vm14, %v3454_v32, %v3458_v29 }
 0x559   : > { %4861 = vmatprep.subr.bf16.mxu0 %v5450_v0 }
 0x55b   : > { %4842 = vmatmul.mubr.bf16.gmra.mrb[44].mxu0 %v3451_v7 }
 0x55c   : > { %4862 = vmatpush3.bf16.msra.mxu0 %v6295_v58  ;;  %4845 = vmatprep.mubr.msk.bf16.mxu0 %vm6564_vm7, %v5450_v0  ;;  %v3460_v58 = vshrl.u32 %v6391_v31, 16 }
 0x55d   : > { %4863 = vmatprep.subr.bf16.mxu0 %v5450_v0 }
 0x55e   : > { %v3462_v36 = vor.u32 %v3460_v58, %v3458_v29 }
 0x560   : > { %4864 = vmatpush3.bf16.msra.mxu0 %v6299_v20  ;;  %v3467_v20 = vsel %vm634_vm14, %v3462_v36, %v3466_v10 }
 0x561   : > { %4865 = vmatprep.subr.bf16.mxu0 %v5450_v0 }
 0x563   : > { %4846 = vmatmul.mubr.bf16.gmra.mrb[48].mxu0 %v3459_v19 }
 0x564   : > { %4866 = vmatpush3.bf16.msra.mxu0 %v6303_v55  ;;  %4849 = vmatprep.mubr.msk.bf16.mxu0 %vm6564_vm7, %v5450_v0  ;;  %v3468_v55 = vshrl.u32 %v5348_v9, 16 }
 0x565   : > { %4867 = vmatprep.subr.bf16.mxu0 %v5450_v0 }
 0x566   : > { %v3470_v37 = vor.u32 %v3468_v55, %v3466_v10 }
 0x568   : > { %4868 = vmatpush3.bf16.msra.mxu0 %v6307_v21  ;;  %v3632_v21 = vsel %vm829_vm3, %v3629_v15, %v3631_v2 }
 0x569   : > { %4869 = vmatprep.subr.bf16.mxu0 %v5450_v0 }
 0x56b   : > { %4850 = vmatmul.mubr.bf16.gmra.mrb[52].mxu0 %v3467_v20 }
 0x56c   : > { %4853 = vmatprep.mubr.msk.bf16.mxu0 %vm6564_vm7, %v5450_v0  ;;  %4870 = vmatpush3.bf16.msra.mxu0 %v6310_v22 }
 0x56d   : > { %4871 = vmatprep.subr.bf16.mxu0 %v5450_v0 }
 0x570   : > { %4872 = vmatpush3.bf16.msra.mxu0 %v6314_v24 }
 0x573   : > { %4854 = vmatmul.mubr.bf16.gmra.mrb[56].mxu0 %v3470_v37 }
 0x574   : > { %4873 = vmatprep.mubr.msk.bf16.mxu0 %vm6564_vm7, %v5450_v0 }
 0x57b   : > { %4874 = vmatmul.mubr.bf16.vlgmr.msra.gmra.mrb[40].mxu0 %v6370_v51 }
 0x57c   : > { %4877 = vmatprep.mubr.msk.bf16.mxu0 %vm6564_vm7, %v5450_v0 }
 0x583   : > { %4878 = vmatmul.mubr.bf16.gmra.mrb[44].mxu0 %v6384_v60 }
 0x584   : > { %4881 = vmatprep.mubr.msk.bf16.mxu0 %vm6564_vm7, %v5450_v0 }
 0x58b   : > { %4882 = vmatmul.mubr.bf16.gmra.mrb[48].mxu0 %v3632_v21 }
 0x61e   : > { %v3746_v22 = vpop.f32.mrb[60].mxu1 }
 0x61f   : > { %v4887_v24 = vpop.f32.mrb[61].mxu1 }
 0x620   : > { %v3749_v40 = vpop.f32.mrb[62].mxu1 }
 0x621   : > { %v4888_v30 = vpop.f32.mrb[63].mxu1 }
 0x626   : > { %v3754_v4 = vpop.f32.mrb[64].mxu1 }
 0x627   : > { %v4891_v28 = vpop.f32.mrb[65].mxu1 }
 0x628   : > { %v3757_v41 = vpop.f32.mrb[66].mxu1 }
 0x629   : > { %v4892_v23 = vpop.f32.mrb[67].mxu1 }
 0x63e   : > { %v3582_v0 = vpop.f32.mrb[52].mxu0 }
 0x63f   : > { %v4960_v12 = vadd.f32 %v4064_v42, %v3582_v0  ;;  %v4851_v43 = vpop.f32.mrb[53].mxu0 }
 0x640   : > { %v3585_v44 = vpop.f32.mrb[54].mxu0 }
 0x641   : > { %v4961_v47 = vadd.f32 %v4960_v12, %v3746_v22  ;;  %v4962_v51 = vadd.f32 %v4064_v42, %v3585_v44  ;;  %v4852_v39 = vpop.f32.mrb[55].mxu0 }
 0x643   : > { %4101 = vst [vmem:[%s6457_s27 + $0x2c] sm:$0xf] %v4961_v47  ;;  %4102 = vst [vmem:[%s6457_s27 + $0x2a] sm:$0xc0] %v4961_v47  ;;  %v4963_v34 = vadd.f32 %v4962_v51, %v3749_v40 }
 0x645   : > { %4103 = vst [vmem:[%s6457_s27 + $0x32] sm:$0xff] %v4963_v34 }
 0x646   : > { %v3590_v50 = vpop.f32.mrb[56].mxu0 }
 0x647   : > { %v4964_v25 = vadd.f32 %v4064_v42, %v3590_v50  ;;  %v4855_v53 = vpop.f32.mrb[57].mxu0 }
 0x648   : > { %v3593_v54 = vpop.f32.mrb[58].mxu0 }
 0x649   : > { %v4965_v46 = vadd.f32 %v4964_v25, %v3754_v4  ;;  %v4856_v35 = vpop.f32.mrb[59].mxu0 }
 0x64b   : > { %4104 = vst [vmem:[%s6457_s27 + $0x3a] sm:$0x3f] %v4965_v46 }
 0x64e   : > { %v3722_v15 = vpop.f32.mrb[40].mxu0 }
 0x64f   : > { %v4954_v45 = vadd.f32 %v4064_v42, %v3722_v15  ;;  %v4875_v59 = vpop.f32.mrb[41].mxu0 }
 0x650   : > { %v3725_v17 = vpop.f32.mrb[42].mxu0 }
 0x651   : > { %3769 = vst [vmem:[%s6457_s27] sm:$0xff] %v4954_v45  ;;  %v4955_v60 = vadd.f32 %v4064_v42, %v3725_v17  ;;  %v4876_v52 = vpop.f32.mrb[43].mxu0 }
 0x653   : > { %3770 = vst [vmem:[%s6457_s27 + $0x8] sm:$0xff] %v4955_v60 }
 0x656   : > { %v3730_v33 = vpop.f32.mrb[44].mxu0 }
 0x657   : > { %v4956_v27 = vadd.f32 %v4064_v42, %v3730_v33  ;;  %v4879_v62 = vpop.f32.mrb[45].mxu0 }
 0x658   : > { %v3733_v31 = vpop.f32.mrb[46].mxu0 }
 0x659   : > { %4096 = vst [vmem:[%s6457_s27 + $0xe] sm:$0xfc] %v4956_v27  ;;  %v4957_v48 = vadd.f32 %v4064_v42, %v3733_v31  ;;  %v4880_v9 = vpop.f32.mrb[47].mxu0 }
 0x65b   : > { %4097 = vst [vmem:[%s6457_s27 + $0x16] sm:$0xff] %v4957_v48 }
 0x65e   : > { %v3738_v56 = vpop.f32.mrb[48].mxu0 }
 0x65f   : > { %v4958_v1 = vadd.f32 %v4064_v42, %v3738_v56  ;;  %v4883_v2 = vpop.f32.mrb[49].mxu0 }
 0x660   : > { %v3741_v3 = vpop.f32.mrb[50].mxu0 }
 0x661   : > { %4098 = vst [vmem:[%s6457_s27 + $0x1e] sm:$0x3] %v4958_v1  ;;  %4099 = vst [vmem:[%s6457_s27 + $0x1c] sm:$0xf0] %v4958_v1  ;;  %v4959_v6 = vadd.f32 %v4064_v42, %v3741_v3  ;;  %v4884_v8 = vpop.f32.mrb[51].mxu0 }
 0x663   : > { %4100 = vst [vmem:[%s6457_s27 + $0x24] sm:$0xff] %v4959_v6 }
 0x664   : > { %5392 = shalt.err (!%p5389_p7)
}
 0x665   : > { %s5393_s12 = scalar_lea.hbm %s6472_s7, 1024  ;;  %s5397_s20 = scalar_lea.hbm %s6526_s4, 2048 }
 0x666   : > { %p5394_p8 = scmp.ne.s32.totalorder %s6472_s7, %s5393_s12  ;;  %p5398_p1 = scmp.lt.u32.totalorder %s6472_s7, %s6526_s4 }
 0x667   : > { %p5399_p0 = scmp.lt.u32.totalorder %s5397_s20, %s5393_s12  ;;  %p5401_p6 = scmp.lt.u32.totalorder %s5393_s12, %s6472_s7 }
 0x668   : > { %p5395_p11 = pnand %p5394_p8, %p6574_p9 }
 0x669   : > { %p5400_p5 = por %p5399_p0, %p5398_p1 }
 0x66a   : > { %p5396_p13 = pneg %p5395_p11 }
 0x66b   : > { %p5402_p10 = por %p5401_p6, %p5400_p5 }
 0x66d   : > { %p5403_p12 = pnand %p5402_p10, %p5396_p13 }
 0x66f   : > { %5406 = shalt.err (!%p5403_p12)
}
 0x670   : > { %s5454_s28 = smov 128   ;;  %s5455_s27 = smov 8  }
 0x671   : > { %5142 = dma.vmem_to_hbm [thread:$0]  (%p6574_p9), %s6474_s30, 1024, %s6472_s7, %s6481_s19, %s5454_s28, %s5454_s28, %s5455_s27  }
 0x672 PF: > { %p5154_p2 = scmp.ge.s32.totalorder %s5445_s18, 2  ;;  %s3813_s29 = sand.u32 1, %s5433_s15  }
 0x673   : > { %p6575_p3 = scmp.ne.s32.totalorder %s6534_s26, 0  ;;  %s3814_s5 = scalar_lea.sflag [#allocation7], %s3813_s29 }
 0x675   : > { %p5149_p4 = pnand %p5154_p2, %p6575_p3 }
 0x677   : > { %5428 = dma.done.wait (!%p5149_p4), %s3814_s5, 1024  }
 0x678   : > { %5430 = vsyncadd (!%p5149_p4), %s3814_s5, 4294966272  ;;  %p15_p7 = scmp.ge.s32.totalorder %s5506_s21, 4   ;;  %s6576_s15 = smov %s5437_s16 }
 0x679   : > { %s6577_s16 = smov %s5441_s17  ;;  %s6578_s17 = smov %s5517_s24 }
 0x67a   : > { %s6579_s18 = smov %s5506_s21  ;;  %17 = sbr.rel (!%p15_p7) target bundleno = 4 (0x4), region = 100 }
 0x681   :  { %3819 = vsyncpa [#allocation6], 1 }
 0x682   :  { %3821 = vsyncpa [#allocation6 + $0x1], 1 }
 0x683   :  { %3822 = vsyncpa [#allocation7], 1 }
 0x684   :  { %3824 = vsyncpa [#allocation7 + $0x1], 1 }

</bundles_post_ra>
